<compile_context>
chip_gen: v7x
topology: tpu7x:2x2x1
jax: 0.10.0
libtpu: 0.0.40
codegen_flags: <defaults>
</compile_context>

<pallas_src>
import functools
import math

import jax
import jax.numpy as jnp
from jax import lax
from jax.experimental import pallas as pl
from jax.experimental.pallas import tpu as pltpu

FP = 128                      # lane-padded feature width (real feature_dim = 96)
HP = 128                      # lane-padded decoder hidden width (real width = 32)
MAX_TILE = 2048               # max row tile (amortizes ~0.35us per-grid-step cost)
NUM_CORE_SPLIT = 2            # leading "parallel" axis for kernel 1 (v7x has 2 TCs)
_VMEM_LIMIT = 32 * 1024 * 1024


def _round_up(x, m):
    return (x + m - 1) // m * m


def _cdiv(a, b):
    return -(-a // b)


# ----------------------------------------------------------------------------
# Kernel 1: per-voxel encoders + V projection + homogeneous Gram accumulation
# ----------------------------------------------------------------------------
def _enc_gram_kernel(hr_ref, at_ref, ew_ref, eb_ref, aw_ref, ab_ref,
                     vw_ref, vb_ref, v_ref, g_ref,
                     *, m_total, tm, blocks_per_core, needs_mask):
    c = pl.program_id(0)          # core-split axis ("parallel")
    i = pl.program_id(1)          # reduction axis within a core ("arbitrary")

    @pl.when(i == 0)
    def _():
        g_ref[...] = jnp.zeros_like(g_ref)

    # per-voxel 1x1x1 conv "encoder": pure VPU broadcast (rank-1, never touch MXU);
    # the bias carries a constant 1.0 in padded lane F (homogeneous column).
    b_feat = hr_ref[...] * ew_ref[...] + eb_ref[...]      # axial / hr  -> K,V side
    a_feat = at_ref[...] * aw_ref[...] + ab_ref[...]      # atlas       -> Q side

    if needs_mask:                                        # only for ragged M (trace-time)
        row = (c * blocks_per_core + i) * tm + lax.broadcasted_iota(
            jnp.int32, (tm, 1), 0)
        valid = row < m_total
        a_feat = jnp.where(valid, a_feat, 0.0)
        b_feat = jnp.where(valid, b_feat, 0.0)

    a_bf = a_feat.astype(jnp.bfloat16)
    b_bf = b_feat.astype(jnp.bfloat16)

    # V projection only (K projection is algebraically folded into the Gram epilogue)
    v_ref[...] = (jnp.dot(b_bf, vw_ref[...], preferred_element_type=jnp.float32)
                  + vb_ref[...]).astype(v_ref.dtype)

    # per-core partial Gram matrix: G_c += A_tile^T @ B_tile  (128x128, f32 acc)
    g_ref[...] += lax.dot_general(
        a_bf, b_bf, (((0,), (0,)), ((), ())), preferred_element_type=jnp.float32)


def encode_and_fold(params, hr_col, atlas_col):
    """hr_col/atlas_col: (M, 1) f32.
    Returns V rows (M_pad, 128) bf16 and the attention-folded layer-0 weight
    w0a_eff = softmax(Q^T K)^T @ W0a, shape (128, HP) bf16."""
    M = hr_col.shape[0]
    nc = NUM_CORE_SPLIT if M >= 32 else 1
    rows_per_core = _cdiv(M, nc)
    tm = min(MAX_TILE, _round_up(rows_per_core, 16))
    T = _cdiv(M, nc * tm)                     # row tiles per core
    M_pad = nc * T * tm
    needs_mask = (M_pad != M)
    if needs_mask:
        pad = M_pad - M
        hr_col = jnp.pad(hr_col, ((0, pad), (0, 0)))
        atlas_col = jnp.pad(atlas_col, ((0, pad), (0, 0)))

    kernel = functools.partial(_enc_gram_kernel, m_total=M, tm=tm,
                               blocks_per_core=T, needs_mask=needs_mask)

    v_rows, g_parts = pl.pallas_call(
        kernel,
        out_shape=(jax.ShapeDtypeStruct((M_pad, FP), jnp.bfloat16),
                   jax.ShapeDtypeStruct((nc, FP, FP), jnp.float32)),
        grid_spec=pltpu.PrefetchScalarGridSpec(
            num_scalar_prefetch=0,
            grid=(nc, T),
            in_specs=[
                pl.BlockSpec((tm, 1), lambda c, i, T=T: (c * T + i, 0)),  # hr voxels
                pl.BlockSpec((tm, 1), lambda c, i, T=T: (c * T + i, 0)),  # atlas voxels
                pl.BlockSpec((1, FP), lambda c, i: (0, 0)),               # enc_w
                pl.BlockSpec((1, FP), lambda c, i: (0, 0)),               # enc_b (+1 lane)
                pl.BlockSpec((1, FP), lambda c, i: (0, 0)),               # enca_w
                pl.BlockSpec((1, FP), lambda c, i: (0, 0)),               # enca_b (+1 lane)
                pl.BlockSpec((FP, FP), lambda c, i: (0, 0)),              # v_w (bf16)
                pl.BlockSpec((1, FP), lambda c, i: (0, 0)),               # v_b
            ],
            out_specs=[
                pl.BlockSpec((tm, FP), lambda c, i, T=T: (c * T + i, 0)),
                pl.BlockSpec((None, FP, FP), lambda c, i: (c, 0, 0)),     # per-core Gram
            ]),
        compiler_params=pltpu.CompilerParams(
            dimension_semantics=("parallel", "arbitrary"),
            vmem_limit_bytes=_VMEM_LIMIT),
    )(hr_col, atlas_col,
      params["enc_w"], params["enc_b"], params["enca_w"], params["enca_b"],
      params["v_w"], params["v_b"])

    # --- tiny per-call epilogue (128-sized, plain JAX) -----------------------
    # combine the per-core partial Grams, recover Q^T K via the augmented
    # (bias-carrying) projection matrices, softmax, and fold into W0a.
    G = jnp.sum(g_parts, axis=0)                                   # (128, 128)
    logits = params["qw_aug"].T @ G @ params["kw_aug"]             # = Q^T K (+ biases)
    f = params["feature_dim"]
    lane = jnp.arange(FP)
    logits = jnp.where(lane[None, :] < f, logits, -jnp.inf)        # kill padded cols
    attn = jax.nn.softmax(logits, axis=-1)
    attn = jnp.where(lane[:, None] < f, attn, 0.0)                 # zero padded rows
    w0a_eff = jnp.dot(attn.T, params["w0a"]).astype(jnp.bfloat16)  # fold attn into W0a
    return v_rows, w0a_eff


# ----------------------------------------------------------------------------
# Kernel 2: fused decoder MLP (attention already folded into layer-0 weight)
# ----------------------------------------------------------------------------
def _decoder_kernel(*refs, n_hidden):
    qf_ref, rel_ref, w0a_ref, w0b_ref, b0_ref = refs[:5]
    hidden_refs = refs[5:5 + 2 * n_hidden]
    wl_ref = refs[5 + 2 * n_hidden]
    bl_ref = refs[6 + 2 * n_hidden]
    o_ref = refs[7 + 2 * n_hidden]

    # layer 0: qf @ (attn^T W0a) + pos_emb @ W0b + b0   (split matmul -> no concat)
    h = (jnp.dot(qf_ref[...], w0a_ref[...], preferred_element_type=jnp.float32)
         + jnp.dot(rel_ref[...], w0b_ref[...], preferred_element_type=jnp.float32)
         + b0_ref[...])
    h = jnp.maximum(h, 0.0)

    for li in range(n_hidden):
        w_ref = hidden_refs[2 * li]
        b_ref = hidden_refs[2 * li + 1]
        h = jnp.dot(h.astype(jnp.bfloat16), w_ref[...],
                    preferred_element_type=jnp.float32) + b_ref[...]
        h = jnp.maximum(h, 0.0)

    # final (width -> 1) layer as a VPU mul + lane reduce (avoid a 1-column matmul)
    pred = jnp.sum(h * wl_ref[...], axis=-1, keepdims=True) + bl_ref[...]
    o_ref[...] = pred.astype(o_ref.dtype)


def cross_decoder(params, qf_rows, rel_rows, w0a_eff):
    """qf_rows: (R, 128) bf16 gathered V rows; rel_rows: (R, 64) bf16 pos-emb."""
    R = qf_rows.shape[0]
    n_hidden = params["n_hidden"]
    tm = min(MAX_TILE, _round_up(max(R, 16), 16))
    grid = (pl.cdiv(R, tm),)

    weights = [w0a_eff, params["w0b"], params["b0"]]
    for w, b in params["hidden"]:
        weights += [w, b]
    weights += [params["w_last"], params["b_last"]]

    in_specs = [
        pl.BlockSpec((tm, qf_rows.shape[1]), lambda i: (i, 0)),
        pl.BlockSpec((tm, rel_rows.shape[1]), lambda i: (i, 0)),
    ] + [pl.BlockSpec(w.shape, lambda i: (0, 0)) for w in weights]

    return pl.pallas_call(
        functools.partial(_decoder_kernel, n_hidden=n_hidden),
        out_shape=jax.ShapeDtypeStruct((R, 1), jnp.float32),
        grid_spec=pltpu.PrefetchScalarGridSpec(
            num_scalar_prefetch=0,
            grid=grid,
            in_specs=in_specs,
            out_specs=pl.BlockSpec((tm, 1), lambda i: (i, 0))),
        compiler_params=pltpu.CompilerParams(
            dimension_semantics=("parallel",),
            vmem_limit_bytes=_VMEM_LIMIT),
    )(qf_rows, rel_rows, *weights)


# ----------------------------------------------------------------------------
# Plain-JAX glue (data-dependent gathers + positional embedding)
# TODO(synk): F.grid_sample is a data-dependent gather; no clean Pallas TPU
#             equivalent, so it stays in plain JAX (vectorized jnp.take on rows).
# ----------------------------------------------------------------------------
def _unnormalize(coords, sizes):
    # align_corners=False:  ((c + 1) * size - 1) / 2
    return ((coords + 1.0) * sizes - 1.0) * 0.5


def _nearest_index(coords, dhw):
    D, H, W = dhw
    sizes = jnp.array([D, H, W], jnp.float32)
    un = _unnormalize(coords, sizes)
    idx = jnp.round(un)                           # round-half-to-even (torch nearbyint)
    inb = jnp.all((idx >= 0) & (idx <= sizes - 1), axis=-1)
    idxc = jnp.clip(idx, 0, sizes - 1).astype(jnp.int32)
    flat = (idxc[:, 0] * H + idxc[:, 1]) * W + idxc[:, 2]
    return flat, inb


def trilinear_sample(vol_rows, coords, dhw):
    """vol_rows: (M,) flattened volume; coords: (K, 3) in (d,h,w), align_corners=False."""
    D, H, W = dhw
    sizes = jnp.array([D, H, W], jnp.float32)
    un = _unnormalize(coords, sizes)
    i0 = jnp.floor(un)
    frac = un - i0
    out = jnp.zeros((coords.shape[0],), jnp.float32)
    for dd in (0, 1):
        for dh in (0, 1):
            for dw in (0, 1):
                off = jnp.array([dd, dh, dw], jnp.float32)
                idx = i0 + off
                w = jnp.prod(jnp.where(off > 0, frac, 1.0 - frac), axis=-1)
                inb = jnp.all((idx >= 0) & (idx <= sizes - 1), axis=-1)
                idxc = jnp.clip(idx, 0, sizes - 1).astype(jnp.int32)
                flat = (idxc[:, 0] * H + idxc[:, 1]) * W + idxc[:, 2]
                vals = jnp.take(vol_rows, flat, axis=0)
                out = out + jnp.where(inb, w, 0.0) * vals
    return out


def position_emb_padded(x):
    """get_embedder(multires=10): [x, sin(2^j x), cos(2^j x)]_{j=0..9} = 63 dims, +1 zero pad.
    Emitted as bf16 (kernel 2 is HBM-bound; it is cast to bf16 for the matmul anyway)."""
    freqs = 2.0 ** jnp.arange(10, dtype=jnp.float32)
    parts = [x]
    for f in freqs:
        parts.append(jnp.sin(x * f))
        parts.append(jnp.cos(x * f))
    parts.append(jnp.zeros((x.shape[0], 1), x.dtype))
    return jnp.concatenate(parts, axis=-1).astype(jnp.bfloat16)    # (K, 64) bf16


# ----------------------------------------------------------------------------
# Parameters (deterministic, in-script init; stored pre-padded/pre-cast for kernels)
# ----------------------------------------------------------------------------
def init_params(key, feature_dim=96, decoder_depth=4, decoder_width=32):
    assert feature_dim < FP and decoder_width <= HP and decoder_depth >= 2
    pe_dim = 3 + 3 * 2 * 10  # 63
    # TODO(synk): decoder.MLP source not provided and its declared in_dim
    # (feature_dim+3) is inconsistent with the actual concat (feature_dim+63);
    # we use a standard ReLU MLP with the actual input width so it runs.
    in_dim = feature_dim + pe_dim

    def linear(k, fan_in, fan_out):
        k1, k2 = jax.random.split(k)
        lim = 1.0 / math.sqrt(fan_in)
        w = jax.random.uniform(k1, (fan_in, fan_out), jnp.float32, -lim, lim)
        b = jax.random.uniform(k2, (fan_out,), jnp.float32, -lim, lim)
        return w, b

    def pad2(w, r, c):
        return jnp.zeros((r, c), w.dtype).at[:w.shape[0], :w.shape[1]].set(w)

    def pad_row(b, c):
        return jnp.zeros((1, c), jnp.float32).at[0, :b.shape[0]].set(b)

    F = feature_dim
    keys = jax.random.split(key, 5 + decoder_depth)
    p = {"feature_dim": F, "n_hidden": decoder_depth - 2}

    # TODO(synk): encoder.RDN / SRResnet / ResCNN source not provided; a
    # deterministic per-voxel 1x1x1 conv (Linear 1->feature_dim) stands in.
    ew, eb = linear(keys[0], 1, F)          # axial / hr encoder   (K,V side)
    aw, ab = linear(keys[1], 1, F)          # atlas encoder        (Q side)
    # padded lane F carries the homogeneous "1" (enables the Gram-matrix refactor)
    p["enc_w"], p["enc_b"] = pad_row(ew[0], FP), pad_row(eb, FP).at[0, F].set(1.0)
    p["enca_w"], p["enca_b"] = pad_row(aw[0], FP), pad_row(ab, FP).at[0, F].set(1.0)

    qw, qb = linear(keys[2], F, F)
    kw, kb = linear(keys[3], F, F)
    vw, vb = linear(keys[4], F, F)
    # augmented projections: row F holds the bias so Q^T K = Wq_aug^T G Wk_aug exactly
    p["qw_aug"] = pad2(qw, FP, FP).at[F, :F].set(qb)               # f32, epilogue only
    p["kw_aug"] = pad2(kw, FP, FP).at[F, :F].set(kb)               # f32, epilogue only
    p["v_w"] = pad2(vw, FP, FP).astype(jnp.bfloat16)
    p["v_b"] = pad_row(vb, FP)

    dims = [in_dim] + [decoder_width] * (decoder_depth - 1) + [1]
    ws, bs = [], []
    for i in range(decoder_depth):
        w, b = linear(keys[5 + i], dims[i], dims[i + 1])
        ws.append(w)
        bs.append(b)
    p["w0a"] = pad2(ws[0][:F], FP, HP)                             # f32; folded with attn per call
    p["w0b"] = pad2(ws[0][F:], 64, HP).astype(jnp.bfloat16)        # pos-emb part (63 -> 64)
    p["b0"] = pad_row(bs[0], HP)
    p["hidden"] = []
    for i in range(1, decoder_depth - 1):
        p["hidden"].append((pad2(ws[i], HP, HP).astype(jnp.bfloat16),
                            pad_row(bs[i], HP)))
    p["w_last"] = pad2(ws[-1].T, 1, HP)                            # (1, HP) f32 lane-reduce
    p["b_last"] = bs[-1].reshape(1, 1)
    return p


# ----------------------------------------------------------------------------
# ArSSR forward
# ----------------------------------------------------------------------------
def arssr_forward(params, hr, coord_gt, atlas, cube_size=None):
    N, C, D, H, W = hr.shape
    assert N == 1 and C == 1, "forward's reshape(1, 3, -1) assumes batch 1"
    M = D * H * W

    hr_col = hr.reshape(M, 1)
    atlas_col = atlas.reshape(M, 1)

    # encoders + attention statistics, fully fused; attn folded into layer-0 weight
    v_rows, w0a_eff = encode_and_fold(params, hr_col, atlas_col)

    # coordinate bookkeeping — rows layout, features/channels on lanes
    coords = coord_gt.reshape(3, -1).T                          # (K, 3), (d,h,w) order
    Kpts = coords.shape[0]
    coord_rows = coord_gt.reshape(3, M).T                       # (M, 3) lookup table
    hr_rows = hr.reshape(M)                                     # (M,)
    scale = jnp.array([D, H, W], jnp.float32)
    rx, ry, rz = 1.0 / D, 1.0 / H, 1.0 / W
    eps = 1e-6

    qf_list, rel_list, area_list, inten_list = [], [], [], []
    for vx in (-1, 1):
        for vy in (-1, 1):
            for vz in (-1, 1):
                shift = jnp.array(
                    [vx * rx + eps, vy * ry + eps, vz * rz + eps], jnp.float32)
                c = jnp.clip(coords + shift, -1.0 + 1e-6, 1.0 - 1e-6)
                flat_idx, inb = _nearest_index(c, (D, H, W))
                # nearest gather of V rows (attn already folded into w0a_eff;
                # gather commutes with the row-wise V @ attn^T @ W0a)
                qf = jnp.where(inb[:, None], jnp.take(v_rows, flat_idx, axis=0), 0)
                qc = jnp.where(inb[:, None],
                               jnp.take(coord_rows, flat_idx, axis=0), 0.0)
                rel = (coords - qc) * scale
                rel_list.append(position_emb_padded(rel))                 # (K, 64) bf16
                qf_list.append(qf)                                        # (K, 128) bf16
                area_list.append(
                    jnp.abs(rel[:, 0] * rel[:, 1] * rel[:, 2]) + 1e-9)
                inten = trilinear_sample(hr_rows, c, (D, H, W))           # (K,)
                inten_list.append((inten + 1e-9) / 8.0)

    # fused 4-layer decoder MLP over all 8*K rows in one kernel
    # TODO(synk): the 8x V-row gather is still a wrapper-side XLA gather; an
    #             in-kernel DMA gather would save its HBM round trip.
    qf_all = jnp.concatenate(qf_list, axis=0)                   # (8K, 128) bf16
    rel_all = jnp.concatenate(rel_list, axis=0)                 # (8K, 64) bf16
    preds = cross_decoder(params, qf_all, rel_all, w0a_eff).reshape(8, Kpts)

    areas = jnp.stack(area_list)                                # (8, K)
    intens = jnp.stack(inten_list)                              # (8, K)
    tot_area = jnp.sum(areas, axis=0)                           # (K,)
    # note: reference pairs each corner's pred with its OWN area (no diagonal swap)
    ret = jnp.sum(intens * preds * (areas / tot_area), axis=0)
    return ret.reshape(1, Kpts, 1)


# ----------------------------------------------------------------------------
if __name__ == "__main__":
    key = jax.random.PRNGKey(0)
    k_hr, k_atlas, k_params = jax.random.split(key, 3)

    S = 8  # small spatial size; feature_dim fixed at 96 by the 96x96 Linears
    hr = jax.random.normal(k_hr, (1, 1, S, S, S), jnp.float32)
    atlas = jax.random.normal(k_atlas, (1, 1, S, S, S), jnp.float32)

    # normalized voxel-center coordinate grid in [-1, 1], channels = (d, h, w)
    r = (jnp.arange(S, dtype=jnp.float32) + 0.5) / S * 2.0 - 1.0
    dd, hh, ww = jnp.meshgrid(r, r, r, indexing="ij")
    coord_gt = jnp.stack([dd, hh, ww], axis=0)[None]            # (1, 3, S, S, S)

    params = init_params(k_params, feature_dim=96, decoder_depth=4,
                         decoder_width=32)

    out = arssr_forward(params, hr, coord_gt, atlas, cube_size=None)
    out = jax.block_until_ready(out)
    assert out.shape == (1, S * S * S, 1), out.shape
    assert bool(jnp.all(jnp.isfinite(out)))
    print("KERNEL_OK")
</pallas_src>

<mosaic_0001>
module attributes {stable_mosaic.version = 11 : i64} {
  func.func @_enc_gram_kernel(%arg0: i32, %arg1: i32, %arg2: memref<256x1xf32, #tpu.memory_space<vmem>>, %arg3: memref<256x1xf32, #tpu.memory_space<vmem>>, %arg4: memref<1x128xf32, #tpu.memory_space<vmem>>, %arg5: memref<1x128xf32, #tpu.memory_space<vmem>>, %arg6: memref<1x128xf32, #tpu.memory_space<vmem>>, %arg7: memref<1x128xf32, #tpu.memory_space<vmem>>, %arg8: memref<128x128xbf16, #tpu.memory_space<vmem>>, %arg9: memref<1x128xf32, #tpu.memory_space<vmem>>, %arg10: memref<256x128xbf16, #tpu.memory_space<vmem>>, %arg11: memref<1x128x128xf32, #tpu.memory_space<vmem>>) attributes {dimension_semantics = [#tpu.dimension_semantics<parallel>, #tpu.dimension_semantics<arbitrary>], iteration_bounds = array<i64: 2, 1>, scalar_prefetch = 0 : i64, scratch_operands = 0 : i64, tpu.core_type = #tpu.core_type<tc>, window_params = [{transform_indices = @transform_0, window_bounds = array<i64: 256, 1>}, {transform_indices = @transform_1, window_bounds = array<i64: 256, 1>}, {pipeline_mode = #tpu.pipeline_mode<synchronous>, transform_indices = @transform_2, window_bounds = array<i64: 1, 128>}, {pipeline_mode = #tpu.pipeline_mode<synchronous>, transform_indices = @transform_3, window_bounds = array<i64: 1, 128>}, {pipeline_mode = #tpu.pipeline_mode<synchronous>, transform_indices = @transform_4, window_bounds = array<i64: 1, 128>}, {pipeline_mode = #tpu.pipeline_mode<synchronous>, transform_indices = @transform_5, window_bounds = array<i64: 1, 128>}, {pipeline_mode = #tpu.pipeline_mode<synchronous>, transform_indices = @transform_6, window_bounds = array<i64: 128, 128>}, {pipeline_mode = #tpu.pipeline_mode<synchronous>, transform_indices = @transform_7, window_bounds = array<i64: 1, 128>}, {transform_indices = @transform_8, window_bounds = array<i64: 256, 128>}, {transform_indices = @transform_9, window_bounds = array<i64: 1, 128, 128>}]} {
    %c0_i32 = arith.constant 0 : i32
    %0 = arith.cmpi eq, %arg1, %c0_i32 : i32
    %1 = arith.extui %0 : i1 to i32
    %c0_i32_0 = arith.constant 0 : i32
    %2 = arith.cmpi ne, %1, %c0_i32_0 : i32
    scf.if %2 {
      %cst_25 = arith.constant 0.000000e+00 : f32
      %35 = vector.broadcast %cst_25 : f32 to vector<128x128xf32>
      %c0_26 = arith.constant 0 : index
      %c0_27 = arith.constant 0 : index
      %c0_28 = arith.constant 0 : index
      %36 = vector.load %arg11[%c0_26, %c0_27, %c0_28] : memref<1x128x128xf32, #tpu.memory_space<vmem>>, vector<1x128x128xf32>
      %37 = vector.shape_cast %36 : vector<1x128x128xf32> to vector<128x128xf32>
      %38 = vector.shape_cast %35 : vector<128x128xf32> to vector<1x128x128xf32>
      tpu.vector_store %arg11[%c0_26, %c0_27, %c0_28], %38 {strides = array<i32>} : memref<1x128x128xf32, #tpu.memory_space<vmem>>, vector<1x128x128xf32>,
    } else {
    }
    %c0 = arith.constant 0 : index
    %c0_1 = arith.constant 0 : index
    %3 = vector.load %arg2[%c0, %c0_1] : memref<256x1xf32, #tpu.memory_space<vmem>>, vector<256x1xf32>
    %c0_2 = arith.constant 0 : index
    %c0_3 = arith.constant 0 : index
    %4 = vector.load %arg4[%c0_2, %c0_3] : memref<1x128xf32, #tpu.memory_space<vmem>>, vector<1x128xf32>
    %5 = vector.broadcast %3 : vector<256x1xf32> to vector<256x128xf32>
    %6 = vector.broadcast %4 : vector<1x128xf32> to vector<256x128xf32>
    %7 = arith.mulf %5, %6 : vector<256x128xf32>
    %c0_4 = arith.constant 0 : index
    %c0_5 = arith.constant 0 : index
    %8 = vector.load %arg5[%c0_4, %c0_5] : memref<1x128xf32, #tpu.memory_space<vmem>>, vector<1x128xf32>
    %9 = vector.broadcast %8 : vector<1x128xf32> to vector<256x128xf32>
    %10 = arith.addf %7, %9 : vector<256x128xf32>
    %c0_6 = arith.constant 0 : index
    %c0_7 = arith.constant 0 : index
    %11 = vector.load %arg3[%c0_6, %c0_7] : memref<256x1xf32, #tpu.memory_space<vmem>>, vector<256x1xf32>
    %c0_8 = arith.constant 0 : index
    %c0_9 = arith.constant 0 : index
    %12 = vector.load %arg6[%c0_8, %c0_9] : memref<1x128xf32, #tpu.memory_space<vmem>>, vector<1x128xf32>
    %13 = vector.broadcast %11 : vector<256x1xf32> to vector<256x128xf32>
    %14 = vector.broadcast %12 : vector<1x128xf32> to vector<256x128xf32>
    %15 = arith.mulf %13, %14 : vector<256x128xf32>
    %c0_10 = arith.constant 0 : index
    %c0_11 = arith.constant 0 : index
    %16 = vector.load %arg7[%c0_10, %c0_11] : memref<1x128xf32, #tpu.memory_space<vmem>>, vector<1x128xf32>
    %17 = vector.broadcast %16 : vector<1x128xf32> to vector<256x128xf32>
    %18 = arith.addf %15, %17 : vector<256x128xf32>
    %19 = arith.truncf %18 : vector<256x128xf32> to vector<256x128xbf16>
    %20 = arith.truncf %10 : vector<256x128xf32> to vector<256x128xbf16>
    %c0_12 = arith.constant 0 : index
    %c0_13 = arith.constant 0 : index
    %21 = vector.load %arg8[%c0_12, %c0_13] : memref<128x128xbf16, #tpu.memory_space<vmem>>, vector<128x128xbf16>
    %cst = arith.constant dense<0.000000e+00> : vector<256x128xf32>
    %22 = tpu.matmul %20, %21, %cst {dimension_numbers = #tpu.dot_dimension_numbers<[1], [0], [0], [1], [0, 0, 1, 1], [], []>} : vector<256x128xbf16>, vector<128x128xbf16>, vector<256x128xf32> -> vector<256x128xf32>
    %c0_14 = arith.constant 0 : index
    %c0_15 = arith.constant 0 : index
    %23 = vector.load %arg9[%c0_14, %c0_15] : memref<1x128xf32, #tpu.memory_space<vmem>>, vector<1x128xf32>
    %24 = vector.broadcast %23 : vector<1x128xf32> to vector<256x128xf32>
    %25 = arith.addf %22, %24 : vector<256x128xf32>
    %26 = arith.truncf %25 : vector<256x128xf32> to vector<256x128xbf16>
    %c0_16 = arith.constant 0 : index
    %c0_17 = arith.constant 0 : index
    %27 = vector.load %arg10[%c0_16, %c0_17] : memref<256x128xbf16, #tpu.memory_space<vmem>>, vector<256x128xbf16>
    tpu.vector_store %arg10[%c0_16, %c0_17], %26 {strides = array<i32>} : memref<256x128xbf16, #tpu.memory_space<vmem>>, vector<256x128xbf16>,
    %c0_18 = arith.constant 0 : index
    %c0_19 = arith.constant 0 : index
    %c0_20 = arith.constant 0 : index
    %28 = vector.load %arg11[%c0_18, %c0_19, %c0_20] : memref<1x128x128xf32, #tpu.memory_space<vmem>>, vector<1x128x128xf32>
    %29 = vector.shape_cast %28 : vector<1x128x128xf32> to vector<128x128xf32>
    %cst_21 = arith.constant dense<0.000000e+00> : vector<128x128xf32>
    %30 = tpu.matmul %19, %20, %cst_21 {dimension_numbers = #tpu.dot_dimension_numbers<[0], [0], [1], [1], [0, 1, 1, 1], [], []>} : vector<256x128xbf16>, vector<256x128xbf16>, vector<128x128xf32> -> vector<128x128xf32>
    %31 = arith.addf %29, %30 : vector<128x128xf32>
    %c0_22 = arith.constant 0 : index
    %c0_23 = arith.constant 0 : index
    %c0_24 = arith.constant 0 : index
    %32 = vector.load %arg11[%c0_22, %c0_23, %c0_24] : memref<1x128x128xf32, #tpu.memory_space<vmem>>, vector<1x128x128xf32>
    %33 = vector.shape_cast %32 : vector<1x128x128xf32> to vector<128x128xf32>
    %34 = vector.shape_cast %31 : vector<128x128xf32> to vector<1x128x128xf32>
    tpu.vector_store %arg11[%c0_22, %c0_23, %c0_24], %34 {strides = array<i32>} : memref<1x128x128xf32, #tpu.memory_space<vmem>>, vector<1x128x128xf32>,
    return
  }
  func.func @transform_0(%arg0: i32, %arg1: i32) -> (i32, i32) {
    %c1_i32 = arith.constant 1 : i32
    %0 = arith.muli %arg0, %c1_i32 : i32
    %1 = arith.addi %0, %arg1 : i32
    %c0_i32 = arith.constant 0 : i32
    %c0_i32_0 = arith.constant 0 : i32
    return %1, %c0_i32 : i32, i32
  }
  func.func @transform_1(%arg0: i32, %arg1: i32) -> (i32, i32) {
    %c1_i32 = arith.constant 1 : i32
    %0 = arith.muli %arg0, %c1_i32 : i32
    %1 = arith.addi %0, %arg1 : i32
    %c0_i32 = arith.constant 0 : i32
    %c0_i32_0 = arith.constant 0 : i32
    return %1, %c0_i32 : i32, i32
  }
  func.func @transform_2(%arg0: i32, %arg1: i32) -> (i32, i32) {
    %c0_i32 = arith.constant 0 : i32
    %c0_i32_0 = arith.constant 0 : i32
    %c0_i32_1 = arith.constant 0 : i32
    return %c0_i32, %c0_i32_0 : i32, i32
  }
  func.func @transform_3(%arg0: i32, %arg1: i32) -> (i32, i32) {
    %c0_i32 = arith.constant 0 : i32
    %c0_i32_0 = arith.constant 0 : i32
    %c0_i32_1 = arith.constant 0 : i32
    return %c0_i32, %c0_i32_0 : i32, i32
  }
  func.func @transform_4(%arg0: i32, %arg1: i32) -> (i32, i32) {
    %c0_i32 = arith.constant 0 : i32
    %c0_i32_0 = arith.constant 0 : i32
    %c0_i32_1 = arith.constant 0 : i32
    return %c0_i32, %c0_i32_0 : i32, i32
  }
  func.func @transform_5(%arg0: i32, %arg1: i32) -> (i32, i32) {
    %c0_i32 = arith.constant 0 : i32
    %c0_i32_0 = arith.constant 0 : i32
    %c0_i32_1 = arith.constant 0 : i32
    return %c0_i32, %c0_i32_0 : i32, i32
  }
  func.func @transform_6(%arg0: i32, %arg1: i32) -> (i32, i32) {
    %c0_i32 = arith.constant 0 : i32
    %c0_i32_0 = arith.constant 0 : i32
    %c0_i32_1 = arith.constant 0 : i32
    return %c0_i32, %c0_i32_0 : i32, i32
  }
  func.func @transform_7(%arg0: i32, %arg1: i32) -> (i32, i32) {
    %c0_i32 = arith.constant 0 : i32
    %c0_i32_0 = arith.constant 0 : i32
    %c0_i32_1 = arith.constant 0 : i32
    return %c0_i32, %c0_i32_0 : i32, i32
  }
  func.func @transform_8(%arg0: i32, %arg1: i32) -> (i32, i32) {
    %c1_i32 = arith.constant 1 : i32
    %0 = arith.muli %arg0, %c1_i32 : i32
    %1 = arith.addi %0, %arg1 : i32
    %c0_i32 = arith.constant 0 : i32
    %c0_i32_0 = arith.constant 0 : i32
    return %1, %c0_i32 : i32, i32
  }
  func.func @transform_9(%arg0: i32, %arg1: i32) -> (i32, i32, i32) {
    %c0_i32 = arith.constant 0 : i32
    %c0_i32_0 = arith.constant 0 : i32
    %c0_i32_1 = arith.constant 0 : i32
    return %arg0, %c0_i32, %c0_i32_0 : i32, i32, i32
  }
}

</mosaic_0001>

<bundles_post_ra>
// kernel: tpu_custom_call.1
= control target key start
LH: loop header
LB: loop body
LE: loop exit
PB: predicated region body
PF: predicated region fallthrough
CT: control target
= control target key end

     0   :  { %s2784_s0 = inlined_call_operand.vmem [shape: f32[512,1], index: 0, kind: input, shape index: {}]   ;;  %s2785_s1 = inlined_call_operand.vmem [shape: f32[512,1], index: 1, kind: input, shape index: {}]   ;;  %s2786_s2 = inlined_call_operand.vmem [shape: f32[1,128], index: 2, kind: input, shape index: {}]   ;;  %s2787_s3 = inlined_call_operand.vmem [shape: f32[1,128], index: 3, kind: input, shape index: {}]   ;;  %s2788_s4 = inlined_call_operand.vmem [shape: f32[1,128], index: 4, kind: input, shape index: {}]   ;;  %s2789_s5 = inlined_call_operand.vmem [shape: f32[1,128], index: 5, kind: input, shape index: {}]   ;;  %s2790_s6 = inlined_call_operand.vmem [shape: bf16[128,128], index: 6, kind: input, shape index: {}]   ;;  %s2791_s7 = inlined_call_operand.vmem [shape: f32[1,128], index: 7, kind: input, shape index: {}]   ;;  %s2792_s8 = inlined_call_operand.hbm [shape: bf16[512,128], index: 8, kind: output, shape index: {0}]   ;;  %s2793_s9 = inlined_call_operand.hbm [shape: f32[2,128,128], index: 9, kind: output, shape index: {1}]  }
   0x1   :  { %2795 = sst [smem:[#allocation8_spill]] %s2784_s0 }
   0x2   :  { %15 = vsyncpa [#allocation3], 0 }
   0x3   :  { %17 = vsyncpa [#allocation3 + $0x1], 0 }
   0x4   :  { %18 = vsyncpa [#allocation5], 0 }
   0x5   :  { %20 = vsyncpa [#allocation5 + $0x1], 0  ;;  %s2283_s30 = smov 0   ;;  %s2285_s10 = smov 0  }
   0x6   :  { %s2287_s11 = smov 0   ;;  %s2289_s12 = smov 0  }
   0x7   :  { %s2291_s13 = smov 0   ;;  %s2293_s14 = smov 0  }
   0x8 LB: > { %s1709_s15 = sadd.s32 4294967295, %s2224_s14   ;;  %s1710_s16 = sadd.s32 4294967294, %s2224_s14   ;;  %s2224_s14 = sphi %s2293_s14, %s26_s14   ;;  %s2220_s13 = sphi %s2291_s13, %s2805_s13   ;;  %s2216_s12 = sphi %s2289_s12, %s2804_s12   ;;  %s2212_s11 = sphi %s2287_s11, %s2803_s11   ;;  %s2208_s10 = sphi %s2285_s10, %s2802_s10   ;;  %s2204_s30 = sphi %s2283_s30, %s2801_s30  }
   0x9   : > { %s38_s17 = sadd.s32 1, %s2220_s13  ;;  %s229_s18 = sadd.s32 1, %s2212_s11 }
   0xa   : > { %p40_p0 = scmp.ge.s32.totalorder %s38_s17, 2  ;;  %p239_p1 = scmp.ne.s32.totalorder %s2212_s11, %s2208_s10 }
   0xb   : > { %p240_p2 = scmp.eq.s32.totalorder %s1709_s15, 1  ;;  %p245_p3 = scmp.ne.s32.totalorder %s2208_s10, %s2204_s30 }
   0xc   : > { %s2807_s17 = smov (%p40_p0, %s38_s17), 0  ;;  %p246_p5 = scmp.eq.s32.totalorder %s1710_s16, 1 }
   0xd   : > { %p2323_p4 = por %p240_p2, %p239_p1  ;;  %s226_s20 = ssub.s32 %s2220_s13, %s2807_s17 }
   0xe   : > { %p1713_p6 = scmp.ge.s32.totalorder %s2224_s14, 1  ;;  %p227_p7 = scmp.eq.s32.totalorder %s226_s20, 0 }
   0xf   : > { %p2330_p8 = por %p246_p5, %p245_p3  ;;  %p330_p9 = scmp.lt.s32.totalorder %s2224_s14, 3 }
  0x10   : > { %s2336_s22 = scalar_select %p227_p7, %s2212_s11, %s229_s18  }
  0x11   : > { %p331_p10 = pnand %p1713_p6, %p330_p9 }
  0x12   : > { %s1716_s23 = sshll.u32 (!%p331_p10), %s2216_s12, 5  ;;  %v2226_v0 = vmov (!%p331_p10), 0   ;;  %v2106_v27 = vld [vmem:[%s2790_s6] sm:$0xff] (!%p331_p10)   ;;  %v2107_v30 = vld [vmem:[%s2790_s6 + $0x8] sm:$0xff] (!%p331_p10)   ;;  %v2108_v33 = vld [vmem:[%s2790_s6 + $0x10] sm:$0xff] (!%p331_p10)   ;;  %s2798_s0 = sld [smem:[#allocation8_spill]] (!%p331_p10) }
  0x13   : > { %334 = sbr.rel (%p331_p10) target bundleno = 588 (0x24c), region = 52  ;;  %2105 = vset.pattern.permute.xlu1 (!%p331_p10), %v2226_v0  ;;  %2104 = vset.pattern.permute.xlu0 (!%p331_p10), %v2226_v0  ;;  %p380_p11 = scmp.lt.s32.totalorder (!%p331_p10), %s1716_s23, 63  ;;  %v2109_v36 = vld [vmem:[%s2790_s6 + $0x18] sm:$0xff] (!%p331_p10)   ;;  %v2110_v39 = vld [vmem:[%s2790_s6 + $0x20] sm:$0xff] (!%p331_p10)   ;;  %v2111_v42 = vld [vmem:[%s2790_s6 + $0x28] sm:$0xff] (!%p331_p10)  }
  0x14   : > { %1990 = vmatprep.subr.bf16.mxu0 (!%p331_p10), %v2106_v27  ;;  %v2112_v45 = vld [vmem:[%s2790_s6 + $0x30] sm:$0xff] (!%p331_p10)   ;;  %v2113_v48 = vld [vmem:[%s2790_s6 + $0x38] sm:$0xff] (!%p331_p10)   ;;  %s2613_s20 = sand.u32 (!%p331_p10), 1, %s2208_s10  }
  0x15   : > { %1991 = vmatpush3.bf16.msra.mxu0 (!%p331_p10), %v2106_v27  ;;  %s1714_s29 = sshll.u32 (!%p331_p10), %s2613_s20, 7 }
  0x16   : > { %1992 = vmatprep.subr.bf16.mxu0 (!%p331_p10), %v2107_v30  ;;  %s2627_s15 = scalar_lea.vmem (!%p331_p10), [#allocation2], %s1714_s29 }
  0x19   : > { %1993 = vmatpush3.bf16.msra.mxu0 (!%p331_p10), %v2107_v30 }
  0x1a   : > { %s2809_s23 = smov (!%p380_p11, %s1716_s23), 63  ;;  %1994 = vmatprep.subr.bf16.mxu0 %v2108_v33 }
  0x1b   : > { %s1717_s24 = sshll.u32 %s2809_s23, 3  ;;  %s2794_s23 = sshll.u32 %s2216_s12, 11 }
  0x1c   : > { %s2347_s27 = scalar_lea.vmem %s2785_s1, %s1717_s24  ;;  %s2395_s28 = scalar_lea.vmem %s2798_s0, %s1717_s24 }
  0x1d   : > { %v703_v1 = vld [vmem:[%s2347_s27 + $0x80] sm:$0xff]  ;;  %v704_v3 = vld [vmem:[%s2347_s27 + $0x88] sm:$0xff]  ;;  %v705_v5 = vld [vmem:[%s2347_s27 + $0x90] sm:$0xff]  ;;  %1995 = vmatpush3.bf16.msra.mxu0 %v2108_v33  ;;  %s1578_s24 = sshll.u32 %s2627_s15, 4  ;;  %s2688_s18 = scalar_lea.hbm %s2792_s8, %s2794_s23  ;;  %s2690_s24 = int_to_ptr.vmem [resolvable:$true] %s1578_s24 }
  0x1e   : > { %v687_v2 = vld [vmem:[%s2347_s27] sm:$0xff]  ;;  %802 = vperm.xlu0 %2104, %v703_v1   ;;  %v688_v4 = vld [vmem:[%s2347_s27 + $0x8] sm:$0xff]  ;;  %v706_v6 = vld [vmem:[%s2347_s27 + $0x98] sm:$0xff]  ;;  %1996 = vmatprep.subr.bf16.mxu0 %v2109_v36  ;;  %s2114_s26 = scalar_lea.vmem %s2690_s24, 2048 }
  0x1f   : > { %722 = vperm.xlu1 %2105, %v687_v2   ;;  %v689_v7 = vld [vmem:[%s2347_s27 + $0x10] sm:$0xff]  ;;  %v690_v8 = vld [vmem:[%s2347_s27 + $0x18] sm:$0xff]  ;;  %v707_v9 = vld [vmem:[%s2347_s27 + $0xa0] sm:$0xff]  ;;  %p2115_p12 = scmp.ne.s32.totalorder %s2690_s24, %s2114_s26 }
  0x20   : > { %v708_v10 = vld [vmem:[%s2347_s27 + $0xa8] sm:$0xff]  ;;  %v691_v11 = vld [vmem:[%s2347_s27 + $0x20] sm:$0xff]  ;;  %v709_v13 = vld [vmem:[%s2347_s27 + $0xb0] sm:$0xff] }
  0x21   : > { %v692_v12 = vld [vmem:[%s2347_s27 + $0x28] sm:$0xff]  ;;  %v710_v14 = vld [vmem:[%s2347_s27 + $0xb8] sm:$0xff]  ;;  %v693_v15 = vld [vmem:[%s2347_s27 + $0x30] sm:$0xff]  ;;  %1997 = vmatpush3.bf16.msra.mxu0 %v2109_v36  ;;  %p2116_p13 = pnand %p2115_p12, %p2323_p4 }
  0x22   : > { %807 = vperm.xlu0 %2104, %v704_v3   ;;  %v694_v16 = vld [vmem:[%s2347_s27 + $0x38] sm:$0xff]  ;;  %v711_v17 = vld [vmem:[%s2347_s27 + $0xc0] sm:$0xff]  ;;  %v712_v18 = vld [vmem:[%s2347_s27 + $0xc8] sm:$0xff]  ;;  %1998 = vmatprep.subr.bf16.mxu0 %v2110_v39 }
  0x23   : > { %727 = vperm.xlu1 %2105, %v688_v4   ;;  %v695_v19 = vld [vmem:[%s2347_s27 + $0x40] sm:$0xff]  ;;  %v696_v20 = vld [vmem:[%s2347_s27 + $0x48] sm:$0xff]  ;;  %v713_v21 = vld [vmem:[%s2347_s27 + $0xd0] sm:$0xff]  ;;  %p2117_p0 = pneg %p2116_p13 }
  0x24   : > { %v714_v22 = vld [vmem:[%s2347_s27 + $0xd8] sm:$0xff]  ;;  %v697_v23 = vld [vmem:[%s2347_s27 + $0x50] sm:$0xff]  ;;  %v715_v25 = vld [vmem:[%s2347_s27 + $0xe0] sm:$0xff] }
  0x25   : > { %v698_v24 = vld [vmem:[%s2347_s27 + $0x58] sm:$0xff]  ;;  %v716_v26 = vld [vmem:[%s2347_s27 + $0xe8] sm:$0xff]  ;;  %v699_v28 = vld [vmem:[%s2347_s27 + $0x60] sm:$0xff]  ;;  %1999 = vmatpush3.bf16.msra.mxu0 %v2110_v39 }
  0x26   : > { %812 = vperm.xlu0 %2104, %v705_v5   ;;  %v700_v29 = vld [vmem:[%s2347_s27 + $0x68] sm:$0xff]  ;;  %v717_v31 = vld [vmem:[%s2347_s27 + $0xf0] sm:$0xff]  ;;  %v718_v32 = vld [vmem:[%s2347_s27 + $0xf8] sm:$0xff]  ;;  %2000 = vmatprep.subr.bf16.mxu0 %v2111_v42 }
  0x27   : > { %817 = vperm.xlu1 %2105, %v706_v6   ;;  %v701_v34 = vld [vmem:[%s2347_s27 + $0x70] sm:$0xff]  ;;  %v702_v35 = vld [vmem:[%s2347_s27 + $0x78] sm:$0xff]  ;;  %v434_v37 = vld [vmem:[%s2395_s28 + $0x88] sm:$0xff] }
  0x28   : > { %v433_v38 = vld [vmem:[%s2395_s28 + $0x80] sm:$0xff]  ;;  %v418_v40 = vld [vmem:[%s2395_s28 + $0x8] sm:$0xff]  ;;  %v436_v43 = vld [vmem:[%s2395_s28 + $0x98] sm:$0xff] }
  0x29   : > { %v417_v41 = vld [vmem:[%s2395_s28] sm:$0xff]  ;;  %v435_v44 = vld [vmem:[%s2395_s28 + $0x90] sm:$0xff]  ;;  %2001 = vmatpush3.bf16.msra.mxu0 %v2111_v42  ;;  %v420_v46 = vld [vmem:[%s2395_s28 + $0x18] sm:$0xff] }
  0x2a   : > { %732 = vperm.xlu0 %2104, %v689_v7   ;;  %v419_v47 = vld [vmem:[%s2395_s28 + $0x10] sm:$0xff]  ;;  %2002 = vmatprep.subr.bf16.mxu0 %v2112_v45  ;;  %v438_v49 = vld [vmem:[%s2395_s28 + $0xa8] sm:$0xff]  ;;  %v437_v50 = vld [vmem:[%s2395_s28 + $0xa0] sm:$0xff] }
  0x2b   : > { %737 = vperm.xlu1 %2105, %v690_v8   ;;  %v422_v51 = vld [vmem:[%s2395_s28 + $0x28] sm:$0xff]  ;;  %v421_v52 = vld [vmem:[%s2395_s28 + $0x20] sm:$0xff]  ;;  %v440_v53 = vld [vmem:[%s2395_s28 + $0xb8] sm:$0xff] }
  0x2c   : > { %v439_v54 = vld [vmem:[%s2395_s28 + $0xb0] sm:$0xff]  ;;  %v424_v55 = vld [vmem:[%s2395_s28 + $0x38] sm:$0xff]  ;;  %v442_v57 = vld [vmem:[%s2395_s28 + $0xc8] sm:$0xff] }
  0x2d   : > { %2003 = vmatpush3.bf16.msra.mxu0 %v2112_v45  ;;  %v423_v56 = vld [vmem:[%s2395_s28 + $0x30] sm:$0xff]  ;;  %v441_v58 = vld [vmem:[%s2395_s28 + $0xc0] sm:$0xff]  ;;  %v426_v59 = vld [vmem:[%s2395_s28 + $0x48] sm:$0xff] }
  0x2e   : > { %822 = vperm.xlu0 %2104, %v707_v9   ;;  %2004 = vmatprep.subr.bf16.mxu0 %v2113_v48  ;;  %v425_v60 = vld [vmem:[%s2395_s28 + $0x40] sm:$0xff]  ;;  %v444_v61 = vld [vmem:[%s2395_s28 + $0xd8] sm:$0xff]  ;;  %v443_v62 = vld [vmem:[%s2395_s28 + $0xd0] sm:$0xff] }
  0x2f   : > { %827 = vperm.xlu1 %2105, %v708_v10   ;;  %v428_v63 = vld [vmem:[%s2395_s28 + $0x58] sm:$0xff]  ;;  %v427_v0 = vld [vmem:[%s2395_s28 + $0x50] sm:$0xff]  ;;  %v446_v1 = vld [vmem:[%s2395_s28 + $0xe8] sm:$0xff] }
  0x30   : > { %v445_v2 = vld [vmem:[%s2395_s28 + $0xe0] sm:$0xff]  ;;  %v430_v3 = vld [vmem:[%s2395_s28 + $0x68] sm:$0xff]  ;;  %v448_v5 = vld [vmem:[%s2395_s28 + $0xf8] sm:$0xff] }
  0x31   : > { %2005 = vmatpush3.bf16.msra.mxu0 %v2113_v48  ;;  %v429_v4 = vld [vmem:[%s2395_s28 + $0x60] sm:$0xff]  ;;  %v447_v6 = vld [vmem:[%s2395_s28 + $0xf0] sm:$0xff]  ;;  %v432_v7 = vld [vmem:[%s2395_s28 + $0x78] sm:$0xff] }
  0x32   : > { %742 = vperm.xlu0 %2104, %v691_v11   ;;  %v431_v8 = vld [vmem:[%s2395_s28 + $0x70] sm:$0xff]  ;;  %s2657_s28 = scalar_lea.vmem [#allocation4], %s1714_s29  ;;  %s2227_s29 = smov [#allocation2]  }
  0x33   : > { %747 = vperm.xlu1 %2105, %v692_v12   ;;  %s2118_s27 = sshll.u32 %s2227_s29, 4  ;;  %s2119_s27 = int_to_ptr.vmem [resolvable:$false] %s2118_s27 }
  0x34   : > { %s2120_s16 = scalar_lea.vmem %s2119_s27, 4096  ;;  %p2121_p1 = scmp.lt.s32.totalorder %s2690_s24, %s2119_s27 }
  0x35   : > { %p2122_p2 = scmp.lt.s32.totalorder %s2120_s16, %s2114_s26 }
  0x36   : > { %832 = vperm.xlu0 %2104, %v709_v13  }
  0x37   : > { %837 = vperm.xlu1 %2105, %v710_v14   ;;  %p2123_p3 = por %p2122_p2, %p2121_p1 }
  0x39   : > { %p2124_p5 = pnand %p2123_p3, %p2117_p0 }
  0x3a   : > { %752 = vperm.xlu0 %2104, %v693_v15  }
  0x3b   : > { %757 = vperm.xlu1 %2105, %v694_v16  }
  0x3e   : > { %842 = vperm.xlu0 %2104, %v711_v17   ;;  %v2447_v17 = vld [vmem:[%s2788_s4] ss:$0 sm:$0xff] }
  0x3f   : > { %847 = vperm.xlu1 %2105, %v712_v18  }
  0x42   : > { %762 = vperm.xlu0 %2104, %v695_v19  }
  0x43   : > { %767 = vperm.xlu1 %2105, %v696_v20  }
  0x46   : > { %852 = vperm.xlu0 %2104, %v713_v21  }
  0x47   : > { %857 = vperm.xlu1 %2105, %v714_v22   ;;  %v2454_v22 = vld [vmem:[%s2789_s5] ss:$0 sm:$0xff] }
  0x4a   : > { %772 = vperm.xlu0 %2104, %v697_v23  }
  0x4b   : > { %777 = vperm.xlu1 %2105, %v698_v24  }
  0x4e   : > { %862 = vperm.xlu0 %2104, %v715_v25  }
  0x4f   : > { %867 = vperm.xlu1 %2105, %v716_v26  }
  0x52   : > { %782 = vperm.xlu0 %2104, %v699_v28  }
  0x53   : > { %787 = vperm.xlu1 %2105, %v700_v29  }
  0x56   : > { %872 = vperm.xlu0 %2104, %v717_v31  }
  0x57   : > { %877 = vperm.xlu1 %2105, %v718_v32  }
  0x5a   : > { %792 = vperm.xlu0 %2104, %v701_v34  }
  0x5b   : > { %797 = vperm.xlu1 %2105, %v702_v35  }
  0x5e   : > { %532 = vperm.xlu0 %2104, %v433_v38  }
  0x5f   : > { %537 = vperm.xlu1 %2105, %v434_v37  }
  0x62   : > { %452 = vperm.xlu0 %2104, %v417_v41  }
  0x63   : > { %457 = vperm.xlu1 %2105, %v418_v40  }
  0x66   : > { %542 = vperm.xlu0 %2104, %v435_v44  }
  0x67   : > { %547 = vperm.xlu1 %2105, %v436_v43  }
  0x6a   : > { %462 = vperm.xlu0 %2104, %v419_v47  }
  0x6b   : > { %467 = vperm.xlu1 %2105, %v420_v46  }
  0x6e   : > { %552 = vperm.xlu0 %2104, %v437_v50  }
  0x6f   : > { %557 = vperm.xlu1 %2105, %v438_v49  }
  0x72   : > { %472 = vperm.xlu0 %2104, %v421_v52  }
  0x73   : > { %477 = vperm.xlu1 %2105, %v422_v51  }
  0x76   : > { %562 = vperm.xlu0 %2104, %v439_v54  }
  0x77   : > { %567 = vperm.xlu1 %2105, %v440_v53  }
  0x7a   : > { %482 = vperm.xlu0 %2104, %v423_v56  }
  0x7b   : > { %487 = vperm.xlu1 %2105, %v424_v55  }
  0x7e   : > { %572 = vperm.xlu0 %2104, %v441_v58  }
  0x7f   : > { %577 = vperm.xlu1 %2105, %v442_v57  }
  0x82   : > { %492 = vperm.xlu0 %2104, %v425_v60  }
  0x83   : > { %497 = vperm.xlu1 %2105, %v426_v59  }
  0x86   : > { %582 = vperm.xlu0 %2104, %v443_v62  }
  0x87   : > { %587 = vperm.xlu1 %2105, %v444_v61  }
  0x8a   : > { %502 = vperm.xlu0 %2104, %v427_v0  }
  0x8b   : > { %507 = vperm.xlu1 %2105, %v428_v63  }
  0x8e   : > { %592 = vperm.xlu0 %2104, %v445_v2  }
  0x8f   : > { %597 = vperm.xlu1 %2105, %v446_v1  }
  0x92   : > { %512 = vperm.xlu0 %2104, %v429_v4  }
  0x93   : > { %517 = vperm.xlu1 %2105, %v430_v3  }
  0x96   : > { %602 = vperm.xlu0 %2104, %v447_v6  }
  0x97   : > { %607 = vperm.xlu1 %2105, %v448_v5  }
  0x9a   : > { %522 = vperm.xlu0 %2104, %v431_v8  }
  0x9b   : > { %527 = vperm.xlu1 %2105, %v432_v7  }
  0x9d   : > { %v803_v9 = vpop.permute.xlu0 %802 }
  0x9e   : > { %v723_v10 = vpop.permute.xlu1 %722  ;;  %v902_v21 = vmul.f32 %v2447_v17, %v803_v9 }
  0x9f   : > { %v886_v30 = vmul.f32 %v2447_v17, %v723_v10 }
  0xa0   : > { %v941_v29 = vadd.f32 %v2454_v22, %v902_v21 }
  0xa1   : > { %v808_v11 = vpop.permute.xlu0 %807  ;;  %v925_v41 = vadd.f32 %v2454_v22, %v886_v30 }
  0xa2   : > { %v728_v12 = vpop.permute.xlu1 %727  ;;  %v903_v20 = vmul.f32 %v2447_v17, %v808_v11 }
  0xa3   : > { %v887_v28 = vmul.f32 %v2447_v17, %v728_v12 }
  0xa4   : > { %v942_v25 = vadd.f32 %v2454_v22, %v903_v20 }
  0xa5   : > { %v813_v13 = vpop.permute.xlu0 %812  ;;  %v926_v38 = vadd.f32 %v2454_v22, %v887_v28 }
  0xa6   : > { %v818_v14 = vpop.permute.xlu1 %817  ;;  %v904_v26 = vmul.f32 %v2447_v17, %v813_v13  ;;  %v965_v37 = vpack.c.bf16 %v942_v25, %v941_v29 }
  0xa7   : > { %v905_v27 = vmul.f32 %v2447_v17, %v818_v14  ;;  %v957_v53 = vpack.c.bf16 %v926_v38, %v925_v41 }
  0xa8   : > { %v943_v35 = vadd.f32 %v2454_v22, %v904_v26 }
  0xa9   : > { %v733_v15 = vpop.permute.xlu0 %732  ;;  %v944_v36 = vadd.f32 %v2454_v22, %v905_v27 }
  0xaa   : > { %v738_v16 = vpop.permute.xlu1 %737  ;;  %v888_v39 = vmul.f32 %v2447_v17, %v733_v15 }
  0xab   : > { %v889_v40 = vmul.f32 %v2447_v17, %v738_v16  ;;  %v966_v48 = vpack.c.bf16 %v944_v36, %v943_v35 }
  0xac   : > { %v927_v51 = vadd.f32 %v2454_v22, %v888_v39 }
  0xad   : > { %v823_v18 = vpop.permute.xlu0 %822  ;;  %v928_v52 = vadd.f32 %v2454_v22, %v889_v40 }
  0xae   : > { %v828_v19 = vpop.permute.xlu1 %827  ;;  %v906_v31 = vmul.f32 %v2447_v17, %v823_v18 }
  0xaf   : > { %v907_v32 = vmul.f32 %v2447_v17, %v828_v19  ;;  %v958_v63 = vpack.c.bf16 %v928_v52, %v927_v51 }
  0xb0   : > { %v945_v42 = vadd.f32 %v2454_v22, %v906_v31 }
  0xb1   : > { %v743_v23 = vpop.permute.xlu0 %742  ;;  %v946_v43 = vadd.f32 %v2454_v22, %v907_v32 }
  0xb2   : > { %v748_v24 = vpop.permute.xlu1 %747  ;;  %v890_v44 = vmul.f32 %v2447_v17, %v743_v23 }
  0xb3   : > { %v891_v45 = vmul.f32 %v2447_v17, %v748_v24  ;;  %v967_v54 = vpack.c.bf16 %v946_v43, %v945_v42 }
  0xb4   : > { %v929_v55 = vadd.f32 %v2454_v22, %v890_v44 }
  0xb5   : > { %v833_v33 = vpop.permute.xlu0 %832  ;;  %v930_v56 = vadd.f32 %v2454_v22, %v891_v45 }
  0xb6   : > { %v838_v34 = vpop.permute.xlu1 %837  ;;  %v908_v49 = vmul.f32 %v2447_v17, %v833_v33 }
  0xb7   : > { %v909_v50 = vmul.f32 %v2447_v17, %v838_v34  ;;  %v959_v4 = vpack.c.bf16 %v930_v56, %v929_v55 }
  0xb8   : > { %1413 = vxpose.xlu0.c.b16.start [1/8] %v965_v37, 128  ;;  %v947_v59 = vadd.f32 %v2454_v22, %v908_v49 }
  0xb9   : > { %v753_v46 = vpop.permute.xlu0 %752  ;;  %v948_v60 = vadd.f32 %v2454_v22, %v909_v50 }
  0xba   : > { %v758_v47 = vpop.permute.xlu1 %757  ;;  %v892_v0 = vmul.f32 %v2447_v17, %v753_v46 }
  0xbb   : > { %v893_v1 = vmul.f32 %v2447_v17, %v758_v47  ;;  %v968_v5 = vpack.c.bf16 %v948_v60, %v947_v59 }
  0xbc   : > { %1414 = vxpose.xlu0.c.b16.cont [2/8] %v966_v48, 128  ;;  %v931_v8 = vadd.f32 %v2454_v22, %v892_v0 }
  0xbd   : > { %v843_v57 = vpop.permute.xlu0 %842  ;;  %v932_v9 = vadd.f32 %v2454_v22, %v893_v1 }
  0xbe   : > { %v848_v58 = vpop.permute.xlu1 %847  ;;  %1397 = vxpose.xlu1.c.b16.start [1/8] %v957_v53, 128  ;;  %v910_v61 = vmul.f32 %v2447_v17, %v843_v57 }
  0xbf   : > { %v911_v62 = vmul.f32 %v2447_v17, %v848_v58  ;;  %v960_v18 = vpack.c.bf16 %v932_v9, %v931_v8  ;;  %v2519_v58 = vld [vmem:[%s2786_s2] ss:$0 sm:$0xff] }
  0xc0   : > { %1415 = vxpose.xlu0.c.b16.cont [3/8] %v967_v54, 128  ;;  %v949_v6 = vadd.f32 %v2454_v22, %v910_v61  ;;  %v2526_v61 = vld [vmem:[%s2787_s3] ss:$0 sm:$0xff] }
  0xc1   : > { %v763_v2 = vpop.permute.xlu0 %762  ;;  %v950_v7 = vadd.f32 %v2454_v22, %v911_v62 }
  0xc2   : > { %v768_v3 = vpop.permute.xlu1 %767  ;;  %1398 = vxpose.xlu1.c.b16.cont [2/8] %v958_v63, 128  ;;  %v894_v10 = vmul.f32 %v2447_v17, %v763_v2 }
  0xc3   : > { %v895_v11 = vmul.f32 %v2447_v17, %v768_v3  ;;  %v969_v14 = vpack.c.bf16 %v950_v7, %v949_v6 }
  0xc4   : > { %1416 = vxpose.xlu0.c.b16.cont [4/8] %v968_v5, 128  ;;  %v933_v19 = vadd.f32 %v2454_v22, %v894_v10 }
  0xc5   : > { %v853_v12 = vpop.permute.xlu0 %852  ;;  %v934_v20 = vadd.f32 %v2454_v22, %v895_v11 }
  0xc6   : > { %v858_v13 = vpop.permute.xlu1 %857  ;;  %1399 = vxpose.xlu1.c.b16.cont [3/8] %v959_v4, 128  ;;  %v912_v15 = vmul.f32 %v2447_v17, %v853_v12 }
  0xc7   : > { %v913_v16 = vmul.f32 %v2447_v17, %v858_v13  ;;  %v961_v29 = vpack.c.bf16 %v934_v20, %v933_v19 }
  0xc8   : > { %v951_v21 = vadd.f32 %v2454_v22, %v912_v15  ;;  %1417 = vxpose.xlu0.c.b16.cont [5/8] %v969_v14, 128 }
  0xc9   : > { %v952_v23 = vadd.f32 %v2454_v22, %v913_v16  ;;  %v773_v24 = vpop.permute.xlu0 %772 }
  0xca   : > { %v778_v25 = vpop.permute.xlu1 %777  ;;  %1400 = vxpose.xlu1.c.b16.cont [4/8] %v960_v18, 128  ;;  %v896_v27 = vmul.f32 %v2447_v17, %v773_v24 }
  0xcb   : > { %v970_v26 = vpack.c.bf16 %v952_v23, %v951_v21  ;;  %v897_v28 = vmul.f32 %v2447_v17, %v778_v25 }
  0xcc   : > { %v935_v30 = vadd.f32 %v2454_v22, %v896_v27 }
  0xcd   : > { %v936_v31 = vadd.f32 %v2454_v22, %v897_v28  ;;  %1418 = vxpose.xlu0.c.b16.cont [6/8] %v970_v26, 128  ;;  %v863_v32 = vpop.permute.xlu0 %862 }
  0xce   : > { %v868_v33 = vpop.permute.xlu1 %867  ;;  %1401 = vxpose.xlu1.c.b16.cont [5/8] %v961_v29, 128  ;;  %v914_v35 = vmul.f32 %v2447_v17, %v863_v32 }
  0xcf   : > { %v962_v34 = vpack.c.bf16 %v936_v31, %v935_v30  ;;  %v915_v36 = vmul.f32 %v2447_v17, %v868_v33 }
  0xd0   : > { %v953_v37 = vadd.f32 %v2454_v22, %v914_v35 }
  0xd1   : > { %v954_v38 = vadd.f32 %v2454_v22, %v915_v36  ;;  %v783_v39 = vpop.permute.xlu0 %782 }
  0xd2   : > { %v788_v40 = vpop.permute.xlu1 %787  ;;  %1402 = vxpose.xlu1.c.b16.cont [6/8] %v962_v34, 128  ;;  %v898_v42 = vmul.f32 %v2447_v17, %v783_v39 }
  0xd3   : > { %v971_v41 = vpack.c.bf16 %v954_v38, %v953_v37  ;;  %v899_v43 = vmul.f32 %v2447_v17, %v788_v40 }
  0xd4   : > { %v937_v44 = vadd.f32 %v2454_v22, %v898_v42 }
  0xd5   : > { %v938_v45 = vadd.f32 %v2454_v22, %v899_v43  ;;  %1419 = vxpose.xlu0.c.b16.cont [7/8] %v971_v41, 128  ;;  %v873_v46 = vpop.permute.xlu0 %872 }
  0xd6   : > { %v878_v47 = vpop.permute.xlu1 %877  ;;  %v916_v49 = vmul.f32 %v2447_v17, %v873_v46 }
  0xd7   : > { %v963_v48 = vpack.c.bf16 %v938_v45, %v937_v44  ;;  %v917_v50 = vmul.f32 %v2447_v17, %v878_v47 }
  0xd8   : > { %v955_v51 = vadd.f32 %v2454_v22, %v916_v49 }
  0xd9   : > { %v956_v52 = vadd.f32 %v2454_v22, %v917_v50  ;;  %1403 = vxpose.xlu1.c.b16.cont [7/8] %v963_v48, 128  ;;  %v793_v53 = vpop.permute.xlu0 %792 }
  0xda   : > { %v798_v54 = vpop.permute.xlu1 %797  ;;  %v900_v56 = vmul.f32 %v2447_v17, %v793_v53 }
  0xdb   : > { %v972_v55 = vpack.c.bf16 %v956_v52, %v955_v51  ;;  %v901_v57 = vmul.f32 %v2447_v17, %v798_v54 }
  0xdc   : > { %v939_v59 = vadd.f32 %v2454_v22, %v900_v56 }
  0xdd   : > { %v940_v60 = vadd.f32 %v2454_v22, %v901_v57  ;;  %1420 = vxpose.xlu0.c.b16.end [8/8] %v972_v55, 128  ;;  %v533_v63 = vpop.permute.xlu0 %532 }
  0xde   : > { %v538_v62 = vpop.permute.xlu1 %537  ;;  %v632_v1 = vmul.f32 %v2519_v58, %v533_v63 }
  0xdf   : > { %v964_v0 = vpack.c.bf16 %v940_v60, %v939_v59  ;;  %v633_v17 = vmul.f32 %v2519_v58, %v538_v62 }
  0xe0   : > { %v671_v3 = vadd.f32 %v2526_v61, %v632_v1 }
  0xe1   : > { %v672_v2 = vadd.f32 %v2526_v61, %v633_v17  ;;  %1404 = vxpose.xlu1.c.b16.end [8/8] %v964_v0, 128  ;;  %v453_v22 = vpop.permute.xlu0 %452 }
  0xe2   : > { %v458_v4 = vpop.permute.xlu1 %457  ;;  %v616_v6 = vmul.f32 %v2519_v58, %v453_v22 }
  0xe3   : > { %v617_v5 = vmul.f32 %v2519_v58, %v458_v4  ;;  %v2534_v7 = vpack.c.bf16 %v672_v2, %v671_v3 }
  0xe4   : > { %v655_v9 = vadd.f32 %v2526_v61, %v616_v6 }
  0xe5   : > { %v656_v8 = vadd.f32 %v2526_v61, %v617_v5  ;;  %1926 = vmatprep.subr.bf16.mxu1 %v2534_v7  ;;  %v543_v11 = vpop.permute.xlu0 %542 }
  0xe6   : > { %v548_v10 = vpop.permute.xlu1 %547  ;;  %v634_v13 = vmul.f32 %v2519_v58, %v543_v11 }
  0xe7   : > { %v635_v12 = vmul.f32 %v2519_v58, %v548_v10  ;;  %v973_v14 = vpack.c.bf16 %v656_v8, %v655_v9 }
  0xe8   : > { %v673_v16 = vadd.f32 %v2526_v61, %v634_v13 }
  0xe9   : > { %v674_v15 = vadd.f32 %v2526_v61, %v635_v12  ;;  %2006 = vmatprep.mubr.bf16.mxu0 %v973_v14  ;;  %1927 = vmatpush3.bf16.msra.mxu1 %v973_v14  ;;  %v463_v19 = vpop.permute.xlu0 %462 }
  0xea   : > { %v468_v18 = vpop.permute.xlu1 %467  ;;  %v618_v21 = vmul.f32 %v2519_v58, %v463_v19 }
  0xeb   : > { %v619_v20 = vmul.f32 %v2519_v58, %v468_v18  ;;  %v2545_v23 = vpack.c.bf16 %v674_v15, %v673_v16 }
  0xec   : > { %v657_v25 = vadd.f32 %v2526_v61, %v618_v21 }
  0xed   : > { %v658_v24 = vadd.f32 %v2526_v61, %v619_v20  ;;  %1928 = vmatprep.subr.bf16.mxu1 %v2545_v23  ;;  %v553_v27 = vpop.permute.xlu0 %552 }
  0xee   : > { %v558_v26 = vpop.permute.xlu1 %557  ;;  %v636_v29 = vmul.f32 %v2519_v58, %v553_v27 }
  0xef   : > { %v637_v28 = vmul.f32 %v2519_v58, %v558_v26  ;;  %v974_v30 = vpack.c.bf16 %v658_v24, %v657_v25 }
  0xf0   : > { %v675_v32 = vadd.f32 %v2526_v61, %v636_v29 }
  0xf1   : > { %v676_v31 = vadd.f32 %v2526_v61, %v637_v28  ;;  %2007 = vmatmul.mubr.bf16.vlgmr.msra.gmra.mrb[0].mxu0 %v974_v30  ;;  %1929 = vmatpush3.bf16.msra.mxu1 %v974_v30  ;;  %v473_v34 = vpop.permute.xlu0 %472 }
  0xf2   : > { %v478_v33 = vpop.permute.xlu1 %477  ;;  %v620_v36 = vmul.f32 %v2519_v58, %v473_v34 }
  0xf3   : > { %v621_v35 = vmul.f32 %v2519_v58, %v478_v33  ;;  %v2556_v37 = vpack.c.bf16 %v676_v31, %v675_v32 }
  0xf4   : > { %v659_v39 = vadd.f32 %v2526_v61, %v620_v36 }
  0xf5   : > { %v660_v38 = vadd.f32 %v2526_v61, %v621_v35  ;;  %1930 = vmatprep.subr.bf16.mxu1 %v2556_v37  ;;  %v563_v41 = vpop.permute.xlu0 %562 }
  0xf6   : > { %v568_v40 = vpop.permute.xlu1 %567  ;;  %v638_v43 = vmul.f32 %v2519_v58, %v563_v41 }
  0xf7   : > { %v639_v42 = vmul.f32 %v2519_v58, %v568_v40  ;;  %v975_v44 = vpack.c.bf16 %v660_v38, %v659_v39 }
  0xf8   : > { %v677_v46 = vadd.f32 %v2526_v61, %v638_v43 }
  0xf9   : > { %v678_v45 = vadd.f32 %v2526_v61, %v639_v42  ;;  %2010 = vmatprep.mubr.bf16.mxu0 %v975_v44  ;;  %1931 = vmatpush3.bf16.msra.mxu1 %v975_v44  ;;  %v483_v48 = vpop.permute.xlu0 %482 }
  0xfa   : > { %v488_v47 = vpop.permute.xlu1 %487  ;;  %v622_v50 = vmul.f32 %v2519_v58, %v483_v48 }
  0xfb   : > { %v623_v49 = vmul.f32 %v2519_v58, %v488_v47  ;;  %v2567_v51 = vpack.c.bf16 %v678_v45, %v677_v46 }
  0xfc   : > { %v661_v53 = vadd.f32 %v2526_v61, %v622_v50 }
  0xfd   : > { %v662_v52 = vadd.f32 %v2526_v61, %v623_v49  ;;  %1932 = vmatprep.subr.bf16.mxu1 %v2567_v51  ;;  %v573_v55 = vpop.permute.xlu0 %572 }
  0xfe   : > { %v578_v54 = vpop.permute.xlu1 %577  ;;  %v640_v57 = vmul.f32 %v2519_v58, %v573_v55 }
  0xff   : > { %v641_v56 = vmul.f32 %v2519_v58, %v578_v54  ;;  %v976_v59 = vpack.c.bf16 %v662_v52, %v661_v53 }
 0x100   : > { %v679_v62 = vadd.f32 %v2526_v61, %v640_v57 }
 0x101   : > { %v680_v60 = vadd.f32 %v2526_v61, %v641_v56  ;;  %2011 = vmatmul.mubr.bf16.gmra.mrb[4].mxu0 %v976_v59  ;;  %1933 = vmatpush3.bf16.msra.mxu1 %v976_v59  ;;  %v493_v0 = vpop.permute.xlu0 %492 }
 0x102   : > { %v498_v63 = vpop.permute.xlu1 %497  ;;  %v624_v1 = vmul.f32 %v2519_v58, %v493_v0 }
 0x103   : > { %v625_v17 = vmul.f32 %v2519_v58, %v498_v63  ;;  %v2578_v2 = vpack.c.bf16 %v680_v60, %v679_v62 }
 0x104   : > { %v663_v4 = vadd.f32 %v2526_v61, %v624_v1  ;;  %v2618_v1 = vld [vmem:[%s2791_s7] ss:$0 sm:$0xff] }
 0x105   : > { %v664_v3 = vadd.f32 %v2526_v61, %v625_v17  ;;  %1934 = vmatprep.subr.bf16.mxu1 %v2578_v2  ;;  %v583_v5 = vpop.permute.xlu0 %582 }
 0x106   : > { %v588_v22 = vpop.permute.xlu1 %587  ;;  %v642_v8 = vmul.f32 %v2519_v58, %v583_v5 }
 0x107   : > { %v643_v6 = vmul.f32 %v2519_v58, %v588_v22  ;;  %v977_v9 = vpack.c.bf16 %v664_v3, %v663_v4 }
 0x108   : > { %v681_v11 = vadd.f32 %v2526_v61, %v642_v8 }
 0x109   : > { %v682_v10 = vadd.f32 %v2526_v61, %v643_v6  ;;  %2014 = vmatprep.mubr.bf16.mxu0 %v977_v9  ;;  %1935 = vmatpush3.bf16.msra.mxu1 %v977_v9  ;;  %v503_v13 = vpop.permute.xlu0 %502 }
 0x10a   : > { %v508_v12 = vpop.permute.xlu1 %507  ;;  %v626_v15 = vmul.f32 %v2519_v58, %v503_v13 }
 0x10b   : > { %v627_v14 = vmul.f32 %v2519_v58, %v508_v12  ;;  %v986_v16 = vpack.c.bf16 %v682_v10, %v681_v11 }
 0x10c   : > { %v665_v19 = vadd.f32 %v2526_v61, %v626_v15 }
 0x10d   : > { %v666_v18 = vadd.f32 %v2526_v61, %v627_v14  ;;  %1936 = vmatprep.subr.bf16.mxu1 %v986_v16  ;;  %v593_v21 = vpop.permute.xlu0 %592 }
 0x10e   : > { %v598_v20 = vpop.permute.xlu1 %597  ;;  %v644_v25 = vmul.f32 %v2519_v58, %v593_v21 }
 0x10f   : > { %v645_v24 = vmul.f32 %v2519_v58, %v598_v20  ;;  %v978_v26 = vpack.c.bf16 %v666_v18, %v665_v19 }
 0x110   : > { %v683_v28 = vadd.f32 %v2526_v61, %v644_v25 }
 0x111   : > { %v684_v27 = vadd.f32 %v2526_v61, %v645_v24  ;;  %2015 = vmatmul.mubr.bf16.gmra.mrb[8].mxu0 %v978_v26  ;;  %1937 = vmatpush3.bf16.msra.mxu1 %v978_v26  ;;  %v513_v30 = vpop.permute.xlu0 %512 }
 0x112   : > { %v518_v29 = vpop.permute.xlu1 %517  ;;  %v628_v32 = vmul.f32 %v2519_v58, %v513_v30 }
 0x113   : > { %v629_v31 = vmul.f32 %v2519_v58, %v518_v29  ;;  %v987_v33 = vpack.c.bf16 %v684_v27, %v683_v28 }
 0x114   : > { %v667_v35 = vadd.f32 %v2526_v61, %v628_v32 }
 0x115   : > { %v668_v34 = vadd.f32 %v2526_v61, %v629_v31  ;;  %1938 = vmatprep.subr.bf16.mxu1 %v987_v33  ;;  %v603_v38 = vpop.permute.xlu0 %602 }
 0x116   : > { %v608_v36 = vpop.permute.xlu1 %607  ;;  %v646_v40 = vmul.f32 %v2519_v58, %v603_v38 }
 0x117   : > { %v647_v39 = vmul.f32 %v2519_v58, %v608_v36  ;;  %v979_v41 = vpack.c.bf16 %v668_v34, %v667_v35 }
 0x118   : > { %v685_v43 = vadd.f32 %v2526_v61, %v646_v40 }
 0x119   : > { %v686_v42 = vadd.f32 %v2526_v61, %v647_v39  ;;  %2018 = vmatprep.mubr.bf16.mxu0 %v979_v41  ;;  %1939 = vmatpush3.bf16.msra.mxu1 %v979_v41  ;;  %v523_v45 = vpop.permute.xlu0 %522 }
 0x11a   : > { %v528_v44 = vpop.permute.xlu1 %527  ;;  %v630_v47 = vmul.f32 %v2519_v58, %v523_v45 }
 0x11b   : > { %v631_v46 = vmul.f32 %v2519_v58, %v528_v44  ;;  %v988_v48 = vpack.c.bf16 %v686_v42, %v685_v43 }
 0x11c   : > { %v669_v50 = vadd.f32 %v2526_v61, %v630_v47 }
 0x11d   : > { %v670_v49 = vadd.f32 %v2526_v61, %v631_v46  ;;  %1940 = vmatprep.subr.bf16.mxu1 %v988_v48 }
 0x11f   : > { %v980_v52 = vpack.c.bf16 %v670_v49, %v669_v50 }
 0x121   : > { %2019 = vmatmul.mubr.bf16.gmra.mrb[12].mxu0 %v980_v52  ;;  %1941 = vmatpush3.bf16.msra.mxu1 %v980_v52 }
 0x122   : > { %2022 = vmatprep.mubr.bf16.mxu0 %v2534_v7 }
 0x127   : > { %v1421_v53 = vpop.trf.xlu0 }
 0x128   : > { %1461 = vmatprep.mubr.bf16.mxu1 %v1421_v53 }
 0x129   : > { %2023 = vmatmul.mubr.bf16.gmra.mrb[16].mxu0 %v2545_v23 }
 0x12a   : > { %2026 = vmatprep.mubr.bf16.mxu0 %v2556_v37 }
 0x12b   : > { %v1405_v54 = vpop.trf.xlu1  ;;  %v1422_v55 = vpop.trf.xlu0 }
 0x12c   : > { %1462 = vmatmul.mubr.bf16.vlgmr.msra.gmra.mrb[0].mxu1 %v1405_v54 }
 0x12d   : > { %1469 = vmatprep.mubr.bf16.mxu1 %v1422_v55 }
 0x12f   : > { %v1406_v58 = vpop.trf.xlu1  ;;  %v1423_v61 = vpop.trf.xlu0 }
 0x131   : > { %2027 = vmatmul.mubr.bf16.gmra.mrb[20].mxu0 %v2567_v51 }
 0x132   : > { %2030 = vmatprep.mubr.bf16.mxu0 %v2578_v2 }
 0x133   : > { %v1407_v7 = vpop.trf.xlu1  ;;  %v1424_v56 = vpop.trf.xlu0 }
 0x134   : > { %1470 = vmatmul.mubr.bf16.gmra.mrb[4].mxu1 %v1406_v58 }
 0x135   : > { %1477 = vmatprep.mubr.bf16.mxu1 %v1423_v61 }
 0x137   : > { %v1408_v23 = vpop.trf.xlu1  ;;  %v1425_v37 = vpop.trf.xlu0 }
 0x139   : > { %2031 = vmatmul.mubr.bf16.gmra.mrb[24].mxu0 %v986_v16 }
 0x13a   : > { %2034 = vmatprep.mubr.bf16.mxu0 %v987_v33 }
 0x13b   : > { %v1409_v57 = vpop.trf.xlu1  ;;  %v1426_v51 = vpop.trf.xlu0 }
 0x13c   : > { %1478 = vmatmul.mubr.bf16.gmra.mrb[8].mxu1 %v1407_v7 }
 0x13d   : > { %1485 = vmatprep.mubr.bf16.mxu1 %v1424_v56 }
 0x13f   : > { %v1410_v59 = vpop.trf.xlu1  ;;  %v1427_v60 = vpop.trf.xlu0 }
 0x141   : > { %2035 = vmatmul.mubr.bf16.gmra.mrb[28].mxu0 %v988_v48 }
 0x143   : > { %v1411_v62 = vpop.trf.xlu1  ;;  %v1428_v63 = vpop.trf.xlu0 }
 0x144   : > { %1486 = vmatmul.mubr.bf16.gmra.mrb[12].mxu1 %v1408_v23 }
 0x145   : > { %1493 = vmatprep.mubr.bf16.mxu1 %v1425_v37 }
 0x147   : > { %v1412_v0 = vpop.trf.xlu1 }
 0x14c   : > { %1494 = vmatmul.mubr.bf16.gmra.mrb[16].mxu1 %v1409_v57 }
 0x14d   : > { %1501 = vmatprep.mubr.bf16.mxu1 %v1426_v51 }
 0x154   : > { %1502 = vmatmul.mubr.bf16.gmra.mrb[20].mxu1 %v1410_v59 }
 0x155   : > { %1509 = vmatprep.mubr.bf16.mxu1 %v1427_v60 }
 0x15c   : > { %1510 = vmatmul.mubr.bf16.gmra.mrb[24].mxu1 %v1411_v62 }
 0x15d   : > { %1517 = vmatprep.mubr.bf16.mxu1 %v1428_v63 }
 0x164   : > { %1518 = vmatmul.mubr.bf16.gmra.mrb[28].mxu1 %v1412_v0 }
 0x1c4   : > { %v2008_v17 = vpop.f32.mrb[0].mxu0 }
 0x1c5   : > { %v1094_v2 = vpop.f32.mrb[1].mxu0  ;;  %v1103_v4 = vadd.f32 %v2008_v17, %v2618_v1 }
 0x1c6   : > { %v2009_v3 = vpop.f32.mrb[2].mxu0  ;;  %v1095_v6 = vadd.f32 %v2618_v1, %v1094_v2 }
 0x1c7   : > { %v1106_v22 = vadd.f32 %v2009_v3, %v2618_v1  ;;  %v1097_v5 = vpop.f32.mrb[3].mxu0 }
 0x1c8   : > { %v1098_v8 = vadd.f32 %v2618_v1, %v1097_v5 }
 0x1c9   : > { %v1815_v9 = vpack.c.bf16 %v1106_v22, %v1103_v4 }
 0x1ca   : > { %v1810_v10 = vpack.c.bf16 %v1098_v8, %v1095_v6 }
 0x1cb   : > { %1887 = vst [vmem:[%s2627_s15 + $0x8] sm:$0xff] %v1815_v9  }
 0x1cc   : > { %1811 = vst [vmem:[%s2627_s15] sm:$0xff] %v1810_v10  }
 0x1d4   : > { %v2012_v11 = vpop.f32.mrb[4].mxu0 }
 0x1d5   : > { %v1110_v12 = vpop.f32.mrb[5].mxu0  ;;  %v1119_v14 = vadd.f32 %v2012_v11, %v2618_v1 }
 0x1d6   : > { %v2013_v13 = vpop.f32.mrb[6].mxu0  ;;  %v1111_v18 = vadd.f32 %v2618_v1, %v1110_v12 }
 0x1d7   : > { %v1122_v15 = vadd.f32 %v2013_v13, %v2618_v1  ;;  %v1113_v16 = vpop.f32.mrb[7].mxu0 }
 0x1d8   : > { %v1114_v19 = vadd.f32 %v2618_v1, %v1113_v16 }
 0x1d9   : > { %v1825_v20 = vpack.c.bf16 %v1122_v15, %v1119_v14 }
 0x1da   : > { %v1820_v21 = vpack.c.bf16 %v1114_v19, %v1111_v18 }
 0x1db   : > { %1889 = vst [vmem:[%s2627_s15 + $0x18] sm:$0xff] %v1825_v20  }
 0x1dc   : > { %1888 = vst [vmem:[%s2627_s15 + $0x10] sm:$0xff] %v1820_v21  }
 0x1e4   : > { %v2016_v24 = vpop.f32.mrb[8].mxu0 }
 0x1e5   : > { %v1126_v25 = vpop.f32.mrb[9].mxu0  ;;  %v1135_v27 = vadd.f32 %v2016_v24, %v2618_v1 }
 0x1e6   : > { %v2017_v26 = vpop.f32.mrb[10].mxu0  ;;  %v1127_v30 = vadd.f32 %v2618_v1, %v1126_v25 }
 0x1e7   : > { %v1138_v28 = vadd.f32 %v2017_v26, %v2618_v1  ;;  %v1129_v29 = vpop.f32.mrb[11].mxu0 }
 0x1e8   : > { %v1130_v31 = vadd.f32 %v2618_v1, %v1129_v29 }
 0x1e9   : > { %v1835_v32 = vpack.c.bf16 %v1138_v28, %v1135_v27 }
 0x1ea   : > { %v1830_v33 = vpack.c.bf16 %v1130_v31, %v1127_v30 }
 0x1eb   : > { %1891 = vst [vmem:[%s2627_s15 + $0x28] sm:$0xff] %v1835_v32  }
 0x1ec   : > { %1890 = vst [vmem:[%s2627_s15 + $0x20] sm:$0xff] %v1830_v33  }
 0x1f4   : > { %v2020_v34 = vpop.f32.mrb[12].mxu0 }
 0x1f5   : > { %v1142_v35 = vpop.f32.mrb[13].mxu0  ;;  %v1151_v38 = vadd.f32 %v2020_v34, %v2618_v1 }
 0x1f6   : > { %v2021_v36 = vpop.f32.mrb[14].mxu0  ;;  %v1143_v41 = vadd.f32 %v2618_v1, %v1142_v35 }
 0x1f7   : > { %v1154_v39 = vadd.f32 %v2021_v36, %v2618_v1  ;;  %v1145_v40 = vpop.f32.mrb[15].mxu0 }
 0x1f8   : > { %v1146_v42 = vadd.f32 %v2618_v1, %v1145_v40 }
 0x1f9   : > { %v1845_v43 = vpack.c.bf16 %v1154_v39, %v1151_v38 }
 0x1fa   : > { %v1840_v44 = vpack.c.bf16 %v1146_v42, %v1143_v41 }
 0x1fb   : > { %1893 = vst [vmem:[%s2627_s15 + $0x38] sm:$0xff] %v1845_v43  }
 0x1fc   : > { %1892 = vst [vmem:[%s2627_s15 + $0x30] sm:$0xff] %v1840_v44   ;;  %v2024_v45 = vpop.f32.mrb[16].mxu0 }
 0x1fd   : > { %v1158_v46 = vpop.f32.mrb[17].mxu0  ;;  %v1167_v48 = vadd.f32 %v2024_v45, %v2618_v1 }
 0x1fe   : > { %v2025_v47 = vpop.f32.mrb[18].mxu0  ;;  %v1159_v53 = vadd.f32 %v2618_v1, %v1158_v46 }
 0x1ff   : > { %v1170_v49 = vadd.f32 %v2025_v47, %v2618_v1  ;;  %v1161_v50 = vpop.f32.mrb[19].mxu0  ;;  %v1942_v52 = vpop.f32.mrb[0].mxu1 }
 0x200   : > { %v1162_v54 = vadd.f32 %v2618_v1, %v1161_v50  ;;  %v1943_v55 = vpop.f32.mrb[1].mxu1 }
 0x201   : > { %v1855_v58 = vpack.c.bf16 %v1170_v49, %v1167_v48  ;;  %v1944_v61 = vadd.f32 %v1943_v55, %v1942_v52  ;;  %v1945_v7 = vpop.f32.mrb[2].mxu1 }
 0x202   : > { %v1850_v56 = vpack.c.bf16 %v1162_v54, %v1159_v53  ;;  %v1946_v23 = vpop.f32.mrb[3].mxu1 }
 0x203   : > { %1895 = vst [vmem:[%s2627_s15 + $0x48] sm:$0xff] %v1855_v58   ;;  %v1947_v37 = vadd.f32 %v1946_v23, %v1945_v7  ;;  %1542 = vst [vmem:[%s2657_s28] sm:$0xff] %v1944_v61 }
 0x204   : > { %1894 = vst [vmem:[%s2627_s15 + $0x40] sm:$0xff] %v1850_v56   ;;  %v2028_v57 = vpop.f32.mrb[20].mxu0 }
 0x205   : > { %v1174_v51 = vpop.f32.mrb[21].mxu0  ;;  %1543 = vst [vmem:[%s2657_s28 + $0x8] sm:$0xff] %v1947_v37  ;;  %v1183_v60 = vadd.f32 %v2028_v57, %v2618_v1 }
 0x206   : > { %v2029_v59 = vpop.f32.mrb[22].mxu0  ;;  %v1175_v17 = vadd.f32 %v2618_v1, %v1174_v51 }
 0x207   : > { %v1186_v62 = vadd.f32 %v2029_v59, %v2618_v1  ;;  %v1177_v63 = vpop.f32.mrb[23].mxu0  ;;  %v1948_v0 = vpop.f32.mrb[4].mxu1 }
 0x208   : > { %v1178_v2 = vadd.f32 %v2618_v1, %v1177_v63  ;;  %v1949_v3 = vpop.f32.mrb[5].mxu1 }
 0x209   : > { %v1865_v4 = vpack.c.bf16 %v1186_v62, %v1183_v60  ;;  %v1950_v22 = vadd.f32 %v1949_v3, %v1948_v0  ;;  %v1951_v5 = vpop.f32.mrb[6].mxu1 }
 0x20a   : > { %v1860_v6 = vpack.c.bf16 %v1178_v2, %v1175_v17  ;;  %v1952_v8 = vpop.f32.mrb[7].mxu1 }
 0x20b   : > { %1897 = vst [vmem:[%s2627_s15 + $0x58] sm:$0xff] %v1865_v4   ;;  %v1953_v9 = vadd.f32 %v1952_v8, %v1951_v5  ;;  %1544 = vst [vmem:[%s2657_s28 + $0x10] sm:$0xff] %v1950_v22 }
 0x20c   : > { %1896 = vst [vmem:[%s2627_s15 + $0x50] sm:$0xff] %v1860_v6   ;;  %v2032_v10 = vpop.f32.mrb[24].mxu0 }
 0x20d   : > { %v1190_v11 = vpop.f32.mrb[25].mxu0  ;;  %1545 = vst [vmem:[%s2657_s28 + $0x18] sm:$0xff] %v1953_v9  ;;  %v1199_v13 = vadd.f32 %v2032_v10, %v2618_v1 }
 0x20e   : > { %v2033_v12 = vpop.f32.mrb[26].mxu0  ;;  %v1191_v18 = vadd.f32 %v2618_v1, %v1190_v11 }
 0x20f   : > { %v1202_v14 = vadd.f32 %v2033_v12, %v2618_v1  ;;  %v1193_v15 = vpop.f32.mrb[27].mxu0  ;;  %v1954_v16 = vpop.f32.mrb[8].mxu1 }
 0x210   : > { %v1194_v19 = vadd.f32 %v2618_v1, %v1193_v15  ;;  %v1955_v20 = vpop.f32.mrb[9].mxu1 }
 0x211   : > { %v1875_v21 = vpack.c.bf16 %v1202_v14, %v1199_v13  ;;  %v1956_v24 = vadd.f32 %v1955_v20, %v1954_v16  ;;  %v1957_v25 = vpop.f32.mrb[10].mxu1 }
 0x212   : > { %v1870_v26 = vpack.c.bf16 %v1194_v19, %v1191_v18  ;;  %v1958_v27 = vpop.f32.mrb[11].mxu1 }
 0x213   : > { %1899 = vst [vmem:[%s2627_s15 + $0x68] sm:$0xff] %v1875_v21   ;;  %v1959_v28 = vadd.f32 %v1958_v27, %v1957_v25  ;;  %1546 = vst [vmem:[%s2657_s28 + $0x20] sm:$0xff] %v1956_v24 }
 0x214   : > { %1898 = vst [vmem:[%s2627_s15 + $0x60] sm:$0xff] %v1870_v26   ;;  %v2036_v29 = vpop.f32.mrb[28].mxu0 }
 0x215   : > { %v1206_v30 = vpop.f32.mrb[29].mxu0  ;;  %1547 = vst [vmem:[%s2657_s28 + $0x28] sm:$0xff] %v1959_v28  ;;  %v1215_v32 = vadd.f32 %v2036_v29, %v2618_v1 }
 0x216   : > { %v2037_v31 = vpop.f32.mrb[30].mxu0  ;;  %v1207_v36 = vadd.f32 %v2618_v1, %v1206_v30 }
 0x217   : > { %v1218_v33 = vadd.f32 %v2037_v31, %v2618_v1  ;;  %v1209_v34 = vpop.f32.mrb[31].mxu0  ;;  %v1960_v35 = vpop.f32.mrb[12].mxu1 }
 0x218   : > { %v1210_v38 = vadd.f32 %v2618_v1, %v1209_v34  ;;  %v1961_v39 = vpop.f32.mrb[13].mxu1 }
 0x219   : > { %v1885_v40 = vpack.c.bf16 %v1218_v33, %v1215_v32  ;;  %v1962_v41 = vadd.f32 %v1961_v39, %v1960_v35  ;;  %v1963_v42 = vpop.f32.mrb[14].mxu1 }
 0x21a   : > { %v1880_v43 = vpack.c.bf16 %v1210_v38, %v1207_v36  ;;  %v1964_v44 = vpop.f32.mrb[15].mxu1 }
 0x21b   : > { %1901 = vst [vmem:[%s2627_s15 + $0x78] sm:$0xff] %v1885_v40   ;;  %v1965_v1 = vadd.f32 %v1964_v44, %v1963_v42  ;;  %1548 = vst [vmem:[%s2657_s28 + $0x30] sm:$0xff] %v1962_v41 }
 0x21c   : > { %1900 = vst [vmem:[%s2627_s15 + $0x70] sm:$0xff] %v1880_v43  }
 0x21d   : > { %2127 = shalt.err (!%p2124_p5)
}
 0x21e   : > { %s2128_s15 = scalar_lea.hbm %s2688_s18, 2048  ;;  %s2132_s29 = scalar_lea.hbm %s2792_s8, 4096 }
 0x21f   : > { %p2129_p6 = scmp.ne.s32.totalorder %s2688_s18, %s2128_s15  ;;  %p2133_p10 = scmp.lt.u32.totalorder %s2688_s18, %s2792_s8 }
 0x220   : > { %p2134_p11 = scmp.lt.u32.totalorder %s2132_s29, %s2128_s15  ;;  %p2136_p13 = scmp.lt.u32.totalorder %s2128_s15, %s2688_s18 }
 0x221   : > { %p2130_p7 = pnand %p2129_p6, %p2323_p4 }
 0x222   : > { %p2135_p12 = por %p2134_p11, %p2133_p10 }
 0x223   : > { %p2131_p9 = pneg %p2130_p7 }
 0x224   : > { %p2137_p0 = por %p2136_p13, %p2135_p12 }
 0x226   : > { %p2138_p1 = pnand %p2137_p0, %p2131_p9 }
 0x228   : > { %2141 = shalt.err (!%p2138_p1)
}
 0x229   : > { %s2228_s26 = smov 64   ;;  %s2229_s23 = smov 4   ;;  %1549 = vst [vmem:[%s2657_s28 + $0x38] sm:$0xff] %v1965_v1  ;;  %v1966_v45 = vpop.f32.mrb[16].mxu1 }
 0x22a   : > { %s2799_s25 = scalar_lea.sflag [#allocation3], %s2613_s20  ;;  %v1967_v46 = vpop.f32.mrb[17].mxu1  ;;  %s1594_s0 = sshll.u32 %s2657_s28, 4  ;;  %s2734_s0 = int_to_ptr.vmem [resolvable:$true] %s1594_s0 }
 0x22b   : > { %2038 = dma.vmem_to_hbm [thread:$0]  (%p2323_p4), %s2690_s24, 2048, %s2688_s18, %s2799_s25, %s2228_s26, %s2228_s26, %s2229_s23   ;;  %v1968_v47 = vadd.f32 %v1967_v46, %v1966_v45  ;;  %v1969_v48 = vpop.f32.mrb[18].mxu1 }
 0x22c   : > { %v1970_v49 = vpop.f32.mrb[19].mxu1  ;;  %s2800_s24 = sshll.u32 %s2216_s12, 11  ;;  %s1564_s29 = scalar_lea.sflag [#allocation5], %s2613_s20 }
 0x22d   : > { %v1971_v50 = vadd.f32 %v1970_v49, %v1969_v48  ;;  %1550 = vst [vmem:[%s2657_s28 + $0x40] sm:$0xff] %v1968_v47  ;;  %v1972_v52 = vpop.f32.mrb[20].mxu1  ;;  %s2732_s15 = scalar_lea.hbm %s2793_s9, %s2800_s24  ;;  %s2142_s27 = scalar_lea.vmem %s2734_s0, 2048 }
 0x22e   : > { %v1973_v53 = vpop.f32.mrb[21].mxu1  ;;  %p2143_p2 = scmp.ne.s32.totalorder %s2734_s0, %s2142_s27  ;;  %s2230_s26 = smov [#allocation4]  }
 0x22f   : > { %1551 = vst [vmem:[%s2657_s28 + $0x48] sm:$0xff] %v1971_v50  ;;  %v1974_v54 = vadd.f32 %v1973_v53, %v1972_v52  ;;  %v1975_v55 = vpop.f32.mrb[22].mxu1  ;;  %s2146_s12 = sshll.u32 %s2230_s26, 4  ;;  %s2147_s12 = int_to_ptr.vmem [resolvable:$false] %s2146_s12 }
 0x230   : > { %v1976_v58 = vpop.f32.mrb[23].mxu1  ;;  %p2144_p3 = pnand %p2143_p2, %p2323_p4  ;;  %s2148_s23 = scalar_lea.vmem %s2147_s12, 4096 }
 0x231   : > { %v1977_v61 = vadd.f32 %v1976_v58, %v1975_v55  ;;  %1552 = vst [vmem:[%s2657_s28 + $0x50] sm:$0xff] %v1974_v54  ;;  %v1978_v7 = vpop.f32.mrb[24].mxu1  ;;  %p2149_p6 = scmp.lt.s32.totalorder %s2734_s0, %s2147_s12  ;;  %p2150_p7 = scmp.lt.s32.totalorder %s2148_s23, %s2142_s27 }
 0x232   : > { %v1979_v56 = vpop.f32.mrb[25].mxu1  ;;  %p2145_p5 = pneg %p2144_p3 }
 0x233   : > { %1553 = vst [vmem:[%s2657_s28 + $0x58] sm:$0xff] %v1977_v61  ;;  %v1980_v23 = vadd.f32 %v1979_v56, %v1978_v7  ;;  %v1981_v37 = vpop.f32.mrb[26].mxu1  ;;  %p2151_p9 = por %p2150_p7, %p2149_p6 }
 0x234   : > { %v1982_v57 = vpop.f32.mrb[27].mxu1 }
 0x235   : > { %v1983_v51 = vadd.f32 %v1982_v57, %v1981_v37  ;;  %1554 = vst [vmem:[%s2657_s28 + $0x60] sm:$0xff] %v1980_v23  ;;  %p2152_p10 = pnand %p2151_p9, %p2145_p5 }
 0x237   : > { %1555 = vst [vmem:[%s2657_s28 + $0x68] sm:$0xff] %v1983_v51  ;;  %v1984_v59 = vpop.f32.mrb[28].mxu1 }
 0x238   : > { %v1985_v60 = vpop.f32.mrb[29].mxu1 }
 0x239   : > { %v1986_v62 = vadd.f32 %v1985_v60, %v1984_v59  ;;  %v1987_v63 = vpop.f32.mrb[30].mxu1 }
 0x23a   : > { %v1988_v0 = vpop.f32.mrb[31].mxu1 }
 0x23b   : > { %v1989_v17 = vadd.f32 %v1988_v0, %v1987_v63  ;;  %1556 = vst [vmem:[%s2657_s28 + $0x70] sm:$0xff] %v1986_v62 }
 0x23d   : > { %1557 = vst [vmem:[%s2657_s28 + $0x78] sm:$0xff] %v1989_v17 }
 0x23e   : > { %2155 = shalt.err (!%p2152_p10)
}
 0x23f   : > { %s2156_s28 = scalar_lea.hbm %s2732_s15, 2048  ;;  %s2160_s18 = scalar_lea.hbm %s2793_s9, 4096 }
 0x240   : > { %p2157_p11 = scmp.ne.s32.totalorder %s2732_s15, %s2156_s28  ;;  %p2161_p0 = scmp.lt.u32.totalorder %s2732_s15, %s2793_s9 }
 0x241   : > { %p2162_p1 = scmp.lt.u32.totalorder %s2160_s18, %s2156_s28  ;;  %p2164_p3 = scmp.lt.u32.totalorder %s2156_s28, %s2732_s15 }
 0x242   : > { %p2158_p12 = pnand %p2157_p11, %p2323_p4 }
 0x243   : > { %p2163_p2 = por %p2162_p1, %p2161_p0 }
 0x244   : > { %p2159_p13 = pneg %p2158_p12 }
 0x245   : > { %p2165_p5 = por %p2164_p3, %p2163_p2 }
 0x247   : > { %p2166_p6 = pnand %p2165_p5, %p2159_p13 }
 0x249   : > { %2169 = shalt.err (!%p2166_p6)
}
 0x24a   : > { %s2231_s27 = smov 128   ;;  %s2232_s12 = smov 8  }
 0x24b   : > { %2039 = dma.vmem_to_hbm [thread:$0]  (%p2323_p4), %s2734_s0, 2048, %s2732_s15, %s1564_s29, %s2231_s27, %s2231_s27, %s2232_s12  }
 0x24c PF: > { %p2049_p7 = scmp.ge.s32.totalorder %s2224_s14, 2  ;;  %s1609_s23 = sand.u32 1, %s2204_s30  }
 0x24d   : > { %s1610_s28 = scalar_lea.sflag [#allocation3], %s1609_s23 }
 0x24e   : > { %p2043_p9 = pnand %p2049_p7, %p2330_p8 }
 0x250   : > { %2195 = dma.done.wait (!%p2043_p9), %s1610_s28, 2048  }
 0x251   : > { %2197 = vsyncadd (!%p2043_p9), %s1610_s28, 4294965248  ;;  %s1619_s25 = scalar_lea.sflag [#allocation5], %s1609_s23 }
 0x252   : > { %2199 = dma.done.wait (!%p2043_p9), %s1619_s25, 2048  }
 0x253   : > { %2201 = vsyncadd (!%p2043_p9), %s1619_s25, 4294965248  ;;  %s26_s14 = sadd.s32 1, %s2224_s14   ;;  %s2801_s30 = smov %s2208_s10 }
 0x254   : > { %p23_p10 = scmp.ge.s32.totalorder %s26_s14, 4   ;;  %s2802_s10 = smov %s2212_s11 }
 0x255   : > { %s2803_s11 = smov %s2336_s22  ;;  %s2804_s12 = smov %s2220_s13 }
 0x256   : > { %s2805_s13 = smov %s2807_s17  ;;  %25 = sbr.rel (!%p23_p10) target bundleno = 8 (0x8), region = 111 }
 0x25d   :  { %1624 = vsyncpa [#allocation3], 1 }
 0x25e   :  { %1626 = vsyncpa [#allocation3 + $0x1], 1 }
 0x25f   :  { %1627 = vsyncpa [#allocation5], 1 }
 0x260   :  { %1629 = vsyncpa [#allocation5 + $0x1], 1 }

</bundles_post_ra>
